<compile_context>
chip_gen: v7x
topology: tpu7x:2x2x1
jax: 0.10.0
libtpu: 0.0.40
codegen_flags: <defaults>
</compile_context>

<pallas_src>
import functools
import math

import jax
import jax.numpy as jnp
from jax import lax
from jax.experimental import pallas as pl
from jax.experimental.pallas import tpu as pltpu


# ------------------------------ kernel ------------------------------------- #

def _mha_kernel(x_ref, ctx_ref, wq_ref, bq_ref, wkv_ref, bkv_ref, wo_ref, bo_ref,
                o_ref, k_scr, v_scr, *, n_heads, scale, mxu_dtype):
    """Fused cross-attention for one (batch, query-tile) grid step."""
    d = wq_ref.shape[1]
    hd = d // n_heads

    # ---- K/V projection: hoisted, runs once per batch (first query tile) ---- #
    @pl.when(pl.program_id(1) == 0)
    def _project_kv():
        kv = jnp.dot(ctx_ref[0], wkv_ref[...],            # merged [K|V] matmul
                     preferred_element_type=jnp.float32) + bkv_ref[...]
        k_scr[...] = kv[:, :d].astype(mxu_dtype)
        v_scr[...] = kv[:, d:].astype(mxu_dtype)

    # ---- Q projection for this query tile (bf16 MXU, f32 accumulate) -------- #
    q = jnp.dot(x_ref[0], wq_ref[...],
                preferred_element_type=jnp.float32) + bq_ref[...]
    q = (q * scale).astype(mxu_dtype)                      # 1/sqrt(head_dim)

    k = k_scr[...]                                         # (Skv, D) bf16
    v = v_scr[...]                                         # (Skv, D) bf16

    # ---- attention: f32 softmax, normalization folded after the PV matmul --- #
    if n_heads == 1:
        s = lax.dot_general(q, k, (((1,), (1,)), ((), ())),        # (TQ, Skv)
                            preferred_element_type=jnp.float32)
        p = jnp.exp(s - jnp.max(s, axis=-1, keepdims=True))
        denom = jnp.sum(p, axis=-1, keepdims=True)                 # (TQ, 1)
        attn = lax.dot_general(p.astype(mxu_dtype), v,
                               (((1,), (0,)), ((), ())),
                               preferred_element_type=jnp.float32) # (TQ, D)
        attn = attn * pl.reciprocal(denom, approx=True)
    else:
        tq = q.shape[0]
        skv = k.shape[0]
        q3 = q.reshape(tq, n_heads, hd).transpose(1, 0, 2)         # (H, TQ, hd)
        k3 = k.reshape(skv, n_heads, hd).transpose(1, 0, 2)        # (H, Skv, hd)
        v3 = v.reshape(skv, n_heads, hd).transpose(1, 0, 2)        # (H, Skv, hd)
        s = lax.dot_general(q3, k3, (((2,), (2,)), ((0,), (0,))),  # (H, TQ, Skv)
                            preferred_element_type=jnp.float32)
        p = jnp.exp(s - jnp.max(s, axis=-1, keepdims=True))
        denom = jnp.sum(p, axis=-1, keepdims=True)                 # (H, TQ, 1)
        o3 = lax.dot_general(p.astype(mxu_dtype), v3,
                             (((2,), (1,)), ((0,), (0,))),
                             preferred_element_type=jnp.float32)   # (H, TQ, hd)
        o3 = o3 * pl.reciprocal(denom, approx=True)
        attn = o3.transpose(1, 0, 2).reshape(tq, d)                # (TQ, D)

    # ---- output projection --------------------------------------------------- #
    out = jnp.dot(attn.astype(mxu_dtype), wo_ref[...],
                  preferred_element_type=jnp.float32) + bo_ref[...]
    o_ref[0] = out.astype(o_ref.dtype)


# ------------------------------ tiling -------------------------------------- #

def _query_tile(sq, skv, d, n_heads, vmem_cap_bytes):
    """Largest query-row tile that divides sq (or is the full extent), is a
    multiple of 16 (bf16 sublane packing), and keeps the rough per-step VMEM
    footprint inside the budget (v7x: 64 MiB, v5e/v6e: 128 MiB physical)."""
    bf16, f32 = 2, 4
    budget = int(0.6 * vmem_cap_bytes)
    # TQ-independent residents: ctx block (x2 bufs, bf16) + K/V scratch +
    # weights/biases + f32 (Skv, 2D) kv intermediate.
    fixed = (2 * skv * d * bf16) + (2 * skv * d * bf16) \
            + (4 * d * d + 6 * d) * bf16 + (skv * 2 * d * f32)
    # Per query row: x (x2) + out (x2) + q/attn f32 temps + per-head scores.
    per_row = (2 * d * bf16) + (2 * d * f32) + (4 * d * f32) + (n_heads * skv * f32)
    cap = (budget - fixed) // max(per_row, 1)
    cap = max(16, min(int(cap), 1024))
    cap = (cap // 16) * 16
    if sq <= cap:
        return sq
    for t in range(cap, 15, -16):                 # multiples of 16
        if sq % t == 0:
            return t
    for t in range(cap, 0, -8):                   # fall back: multiples of 8
        if sq % t == 0:
            return t
    return sq                                     # full extent always legal


# ------------------------------ wrapper ------------------------------------- #

def attention_forward(x, context, params, n_heads=1, mxu_dtype=jnp.bfloat16):
    """out = MultiheadAttention(dim, n_heads, batch_first=True)(x, context, context)."""
    B, Sq, D = x.shape
    Bc, Skv, Dc = context.shape
    assert Bc == B and Dc == D and D % n_heads == 0
    out_dtype = x.dtype

    # bf16 activations streamed from HBM: halves DMA bytes + context VMEM.
    x_lp = x.astype(mxu_dtype)
    ctx_lp = context.astype(mxu_dtype)

    # Transpose PyTorch (out,in)-layout weights once, merge K|V, pre-cast bf16.
    wq_t = params["wq"].T.astype(mxu_dtype)                                    # (D, D)
    wkv_t = jnp.concatenate([params["wk"].T, params["wv"].T], axis=1).astype(mxu_dtype)  # (D, 2D)
    wo_t = params["wo"].T.astype(mxu_dtype)                                    # (D, D)
    bq = params["bq"].reshape(1, D).astype(jnp.float32)
    bkv = jnp.concatenate([params["bk"], params["bv"]]).reshape(1, 2 * D).astype(jnp.float32)
    bo = params["bo"].reshape(1, D).astype(jnp.float32)

    try:
        vmem_cap = int(pltpu.get_tpu_info().vmem_capacity_bytes)
    except Exception:
        vmem_cap = 64 * 1024 * 1024    # conservative (v7x per-TC)

    TQ = _query_tile(Sq, Skv, D, n_heads, vmem_cap)
    grid = (B, Sq // TQ)

    kernel = functools.partial(
        _mha_kernel,
        n_heads=n_heads,
        scale=1.0 / math.sqrt(D // n_heads),
        mxu_dtype=mxu_dtype,
    )

    cost = pl.CostEstimate(
        flops=2 * B * (Sq * D * D + Skv * D * 2 * D + 2 * Sq * Skv * D + Sq * D * D),
        transcendentals=B * n_heads * Sq * Skv,
        bytes_accessed=int(
            (x_lp.size + ctx_lp.size + wq_t.size + wkv_t.size + wo_t.size) * 2
            + (bq.size + bkv.size + bo.size) * 4
            + B * Sq * D * jnp.dtype(out_dtype).itemsize),
    )

    def call(resident_kwargs):
        def res_spec(shape):
            # Constant-index (VMEM-resident) block: weights / biases.
            return pl.BlockSpec(shape, lambda b, qi: (0, 0), **resident_kwargs)

        return pl.pallas_call(
            kernel,
            out_shape=jax.ShapeDtypeStruct((B, Sq, D), out_dtype),
            grid=grid,
            in_specs=[
                pl.BlockSpec((1, TQ, D), lambda b, qi: (b, qi, 0)),   # x (query tile)
                pl.BlockSpec((1, Skv, D), lambda b, qi: (b, 0, 0)),   # context (per batch)
                res_spec((D, D)),        # Wq^T
                res_spec((1, D)),        # bq
                res_spec((D, 2 * D)),    # [Wk|Wv]^T
                res_spec((1, 2 * D)),    # [bk|bv]
                res_spec((D, D)),        # Wo^T
                res_spec((1, D)),        # bo
            ],
            out_specs=pl.BlockSpec((1, TQ, D), lambda b, qi: (b, qi, 0)),
            scratch_shapes=[
                pltpu.VMEM((Skv, D), mxu_dtype),   # projected K (per batch)
                pltpu.VMEM((Skv, D), mxu_dtype),   # projected V (per batch)
            ],
            compiler_params=pltpu.CompilerParams(
                dimension_semantics=("parallel", "arbitrary"),
                vmem_limit_bytes=min(int(0.75 * vmem_cap), 100 * 1024 * 1024)),
            cost_estimate=cost,
        )(x_lp, ctx_lp, wq_t, bq, wkv_t, bkv, wo_t, bo)

    try:
        # Single-buffer the never-changing weight/bias blocks (halves their VMEM).
        return call(dict(pipeline_mode=pl.Buffered(1)))
    except Exception:
        # Fallback if this jax build rejects pipeline_mode on pallas_call specs.
        return call({})


# ------------------------------ reference ----------------------------------- #

def _reference(x, context, params, n_heads=1):
    B, Sq, D = x.shape
    Skv = context.shape[1]
    hd = D // n_heads
    q = x @ params["wq"].T + params["bq"]
    k = context @ params["wk"].T + params["bk"]
    v = context @ params["wv"].T + params["bv"]
    q = q.reshape(B, Sq, n_heads, hd).transpose(0, 2, 1, 3)
    k = k.reshape(B, Skv, n_heads, hd).transpose(0, 2, 1, 3)
    v = v.reshape(B, Skv, n_heads, hd).transpose(0, 2, 1, 3)
    s = jnp.einsum("bhqd,bhkd->bhqk", q, k) / jnp.sqrt(jnp.float32(hd))
    p = jax.nn.softmax(s, axis=-1)
    o = jnp.einsum("bhqk,bhkd->bhqd", p, v)
    o = o.transpose(0, 2, 1, 3).reshape(B, Sq, D)
    return o @ params["wo"].T + params["bo"]


# ------------------------------ main ----------------------------------------- #

if __name__ == "__main__":
    for (B, Sq, Skv, dim, n_heads) in [(2, 8, 16, 32, 1), (2, 16, 16, 32, 4)]:
        key = jax.random.PRNGKey(0)
        (kx, kc, kq, kk, kv, ko, kbq, kbk, kbv, kbo) = jax.random.split(key, 10)

        x = jax.random.normal(kx, (B, Sq, dim), dtype=jnp.float32)
        context = jax.random.normal(kc, (B, Skv, dim), dtype=jnp.float32)

        wscale = 1.0 / math.sqrt(dim)
        params = {
            # PyTorch layout: (out_features, in_features), applied as x @ W.T + b
            "wq": jax.random.normal(kq, (dim, dim), jnp.float32) * wscale,
            "wk": jax.random.normal(kk, (dim, dim), jnp.float32) * wscale,
            "wv": jax.random.normal(kv, (dim, dim), jnp.float32) * wscale,
            "wo": jax.random.normal(ko, (dim, dim), jnp.float32) * wscale,
            "bq": jax.random.normal(kbq, (dim,), jnp.float32) * 0.05,
            "bk": jax.random.normal(kbk, (dim,), jnp.float32) * 0.05,
            "bv": jax.random.normal(kbv, (dim,), jnp.float32) * 0.05,
            "bo": jax.random.normal(kbo, (dim,), jnp.float32) * 0.05,
        }

        out = jax.block_until_ready(
            attention_forward(x, context, params, n_heads=n_heads))
        ref = _reference(x, context, params, n_heads=n_heads)

        assert out.shape == (B, Sq, dim)
        # bf16 MXU operands (f32 accumulation) + approx EUP reciprocal ->
        # loosened tolerance vs. the f32 reference.
        err = float(jnp.max(jnp.abs(out - ref)))
        assert jnp.allclose(out, ref, atol=2e-2, rtol=2e-2), (
            f"mismatch vs reference (n_heads={n_heads}): max abs err {err}")

    print("KERNEL_OK")
</pallas_src>

<mosaic_0001>
module attributes {stable_mosaic.version = 11 : i64} {
  func.func @_mha_kernel(%arg0: i32, %arg1: i32, %arg2: memref<1x8x32xbf16, #tpu.memory_space<vmem>>, %arg3: memref<1x16x32xbf16, #tpu.memory_space<vmem>>, %arg4: memref<32x32xbf16, #tpu.memory_space<vmem>>, %arg5: memref<1x32xf32, #tpu.memory_space<vmem>>, %arg6: memref<32x64xbf16, #tpu.memory_space<vmem>>, %arg7: memref<1x64xf32, #tpu.memory_space<vmem>>, %arg8: memref<32x32xbf16, #tpu.memory_space<vmem>>, %arg9: memref<1x32xf32, #tpu.memory_space<vmem>>, %arg10: memref<1x8x32xf32, #tpu.memory_space<vmem>>, %arg11: memref<16x32xbf16, #tpu.memory_space<vmem>>, %arg12: memref<16x32xbf16, #tpu.memory_space<vmem>>) attributes {dimension_semantics = [#tpu.dimension_semantics<parallel>, #tpu.dimension_semantics<arbitrary>], iteration_bounds = array<i64: 2, 1>, scalar_prefetch = 0 : i64, scratch_operands = 2 : i64, tpu.core_type = #tpu.core_type<tc>, window_params = [{transform_indices = @transform_0, window_bounds = array<i64: 1, 8, 32>}, {transform_indices = @transform_1, window_bounds = array<i64: 1, 16, 32>}, {pipeline_mode = #tpu.pipeline_mode<synchronous>, transform_indices = @transform_2, window_bounds = array<i64: 32, 32>}, {pipeline_mode = #tpu.pipeline_mode<synchronous>, transform_indices = @transform_3, window_bounds = array<i64: 1, 32>}, {pipeline_mode = #tpu.pipeline_mode<synchronous>, transform_indices = @transform_4, window_bounds = array<i64: 32, 64>}, {pipeline_mode = #tpu.pipeline_mode<synchronous>, transform_indices = @transform_5, window_bounds = array<i64: 1, 64>}, {pipeline_mode = #tpu.pipeline_mode<synchronous>, transform_indices = @transform_6, window_bounds = array<i64: 32, 32>}, {pipeline_mode = #tpu.pipeline_mode<synchronous>, transform_indices = @transform_7, window_bounds = array<i64: 1, 32>}, {transform_indices = @transform_8, window_bounds = array<i64: 1, 8, 32>}]} {
    %c0_i32 = arith.constant 0 : i32
    %0 = arith.cmpi eq, %arg1, %c0_i32 : i32
    %1 = arith.extui %0 : i1 to i32
    %c0_i32_0 = arith.constant 0 : i32
    %2 = arith.cmpi ne, %1, %c0_i32_0 : i32
    scf.if %2 {
      %c0_24 = arith.constant 0 : index
      %c0_25 = arith.constant 0 : index
      %c0_26 = arith.constant 0 : index
      %37 = vector.load %arg3[%c0_24, %c0_25, %c0_26] : memref<1x16x32xbf16, #tpu.memory_space<vmem>>, vector<1x16x32xbf16>
      %38 = vector.shape_cast %37 : vector<1x16x32xbf16> to vector<16x32xbf16>
      %c0_27 = arith.constant 0 : index
      %c0_28 = arith.constant 0 : index
      %39 = vector.load %arg6[%c0_27, %c0_28] : memref<32x64xbf16, #tpu.memory_space<vmem>>, vector<32x64xbf16>
      %cst_29 = arith.constant dense<0.000000e+00> : vector<16x64xf32>
      %40 = tpu.matmul %38, %39, %cst_29 {dimension_numbers = #tpu.dot_dimension_numbers<[1], [0], [0], [1], [0, 0, 1, 1], [], []>} : vector<16x32xbf16>, vector<32x64xbf16>, vector<16x64xf32> -> vector<16x64xf32>
      %c0_30 = arith.constant 0 : index
      %c0_31 = arith.constant 0 : index
      %41 = vector.load %arg7[%c0_30, %c0_31] : memref<1x64xf32, #tpu.memory_space<vmem>>, vector<1x64xf32>
      %42 = vector.broadcast %41 : vector<1x64xf32> to vector<16x64xf32>
      %43 = arith.addf %40, %42 : vector<16x64xf32>
      %44 = vector.extract_strided_slice %43 {offsets = [0, 0], sizes = [16, 32], strides = [1, 1]} : vector<16x64xf32> to vector<16x32xf32>
      %45 = arith.truncf %44 : vector<16x32xf32> to vector<16x32xbf16>
      %c0_32 = arith.constant 0 : index
      %c0_33 = arith.constant 0 : index
      %46 = vector.load %arg11[%c0_32, %c0_33] : memref<16x32xbf16, #tpu.memory_space<vmem>>, vector<16x32xbf16>
      tpu.vector_store %arg11[%c0_32, %c0_33], %45 {strides = array<i32>} : memref<16x32xbf16, #tpu.memory_space<vmem>>, vector<16x32xbf16>,
      %47 = vector.extract_strided_slice %43 {offsets = [0, 32], sizes = [16, 32], strides = [1, 1]} : vector<16x64xf32> to vector<16x32xf32>
      %48 = arith.truncf %47 : vector<16x32xf32> to vector<16x32xbf16>
      %c0_34 = arith.constant 0 : index
      %c0_35 = arith.constant 0 : index
      %49 = vector.load %arg12[%c0_34, %c0_35] : memref<16x32xbf16, #tpu.memory_space<vmem>>, vector<16x32xbf16>
      tpu.vector_store %arg12[%c0_34, %c0_35], %48 {strides = array<i32>} : memref<16x32xbf16, #tpu.memory_space<vmem>>, vector<16x32xbf16>,
    } else {
    }
    %c0 = arith.constant 0 : index
    %c0_1 = arith.constant 0 : index
    %c0_2 = arith.constant 0 : index
    %3 = vector.load %arg2[%c0, %c0_1, %c0_2] : memref<1x8x32xbf16, #tpu.memory_space<vmem>>, vector<1x8x32xbf16>
    %4 = vector.shape_cast %3 : vector<1x8x32xbf16> to vector<8x32xbf16>
    %c0_3 = arith.constant 0 : index
    %c0_4 = arith.constant 0 : index
    %5 = vector.load %arg4[%c0_3, %c0_4] : memref<32x32xbf16, #tpu.memory_space<vmem>>, vector<32x32xbf16>
    %cst = arith.constant dense<0.000000e+00> : vector<8x32xf32>
    %6 = tpu.matmul %4, %5, %cst {dimension_numbers = #tpu.dot_dimension_numbers<[1], [0], [0], [1], [0, 0, 1, 1], [], []>} : vector<8x32xbf16>, vector<32x32xbf16>, vector<8x32xf32> -> vector<8x32xf32>
    %c0_5 = arith.constant 0 : index
    %c0_6 = arith.constant 0 : index
    %7 = vector.load %arg5[%c0_5, %c0_6] : memref<1x32xf32, #tpu.memory_space<vmem>>, vector<1x32xf32>
    %8 = vector.broadcast %7 : vector<1x32xf32> to vector<8x32xf32>
    %9 = arith.addf %6, %8 : vector<8x32xf32>
    %cst_7 = arith.constant 0.176776692 : f32
    %10 = vector.broadcast %cst_7 : f32 to vector<8x32xf32>
    %11 = arith.mulf %9, %10 : vector<8x32xf32>
    %12 = arith.truncf %11 : vector<8x32xf32> to vector<8x32xbf16>
    %c0_8 = arith.constant 0 : index
    %c0_9 = arith.constant 0 : index
    %13 = vector.load %arg11[%c0_8, %c0_9] : memref<16x32xbf16, #tpu.memory_space<vmem>>, vector<16x32xbf16>
    %c0_10 = arith.constant 0 : index
    %c0_11 = arith.constant 0 : index
    %14 = vector.load %arg12[%c0_10, %c0_11] : memref<16x32xbf16, #tpu.memory_space<vmem>>, vector<16x32xbf16>
    %cst_12 = arith.constant dense<0.000000e+00> : vector<8x16xf32>
    %15 = tpu.matmul %12, %13, %cst_12 {dimension_numbers = #tpu.dot_dimension_numbers<[1], [1], [0], [0], [0, 0, 1, 0], [], []>} : vector<8x32xbf16>, vector<16x32xbf16>, vector<8x16xf32> -> vector<8x16xf32>
    %cst_13 = arith.constant dense<0xFF800000> : vector<8xf32>
    %16 = vector.multi_reduction <maximumf>, %15, %cst_13 [1] : vector<8x16xf32> to vector<8xf32>
    %17 = vector.shape_cast %16 : vector<8xf32> to vector<8x1xf32>
    %18 = vector.broadcast %17 : vector<8x1xf32> to vector<8x16xf32>
    %19 = arith.subf %15, %18 : vector<8x16xf32>
    %20 = math.exp %19 : vector<8x16xf32>
    %cst_14 = arith.constant dense<0.000000e+00> : vector<8xf32>
    %21 = vector.multi_reduction <add>, %20, %cst_14 [1] : vector<8x16xf32> to vector<8xf32>
    %22 = vector.shape_cast %21 : vector<8xf32> to vector<8x1xf32>
    %23 = arith.truncf %20 : vector<8x16xf32> to vector<8x16xbf16>
    %cst_15 = arith.constant dense<0.000000e+00> : vector<8x32xf32>
    %24 = tpu.matmul %23, %14, %cst_15 {dimension_numbers = #tpu.dot_dimension_numbers<[1], [0], [0], [1], [0, 0, 1, 1], [], []>} : vector<8x16xbf16>, vector<16x32xbf16>, vector<8x32xf32> -> vector<8x32xf32>
    %25 = tpu.reciprocal %22 {approx = true} : vector<8x1xf32> -> vector<8x1xf32>
    %26 = vector.broadcast %25 : vector<8x1xf32> to vector<8x32xf32>
    %27 = arith.mulf %24, %26 : vector<8x32xf32>
    %28 = arith.truncf %27 : vector<8x32xf32> to vector<8x32xbf16>
    %c0_16 = arith.constant 0 : index
    %c0_17 = arith.constant 0 : index
    %29 = vector.load %arg8[%c0_16, %c0_17] : memref<32x32xbf16, #tpu.memory_space<vmem>>, vector<32x32xbf16>
    %cst_18 = arith.constant dense<0.000000e+00> : vector<8x32xf32>
    %30 = tpu.matmul %28, %29, %cst_18 {dimension_numbers = #tpu.dot_dimension_numbers<[1], [0], [0], [1], [0, 0, 1, 1], [], []>} : vector<8x32xbf16>, vector<32x32xbf16>, vector<8x32xf32> -> vector<8x32xf32>
    %c0_19 = arith.constant 0 : index
    %c0_20 = arith.constant 0 : index
    %31 = vector.load %arg9[%c0_19, %c0_20] : memref<1x32xf32, #tpu.memory_space<vmem>>, vector<1x32xf32>
    %32 = vector.broadcast %31 : vector<1x32xf32> to vector<8x32xf32>
    %33 = arith.addf %30, %32 : vector<8x32xf32>
    %c0_21 = arith.constant 0 : index
    %c0_22 = arith.constant 0 : index
    %c0_23 = arith.constant 0 : index
    %34 = vector.load %arg10[%c0_21, %c0_22, %c0_23] : memref<1x8x32xf32, #tpu.memory_space<vmem>>, vector<1x8x32xf32>
    %35 = vector.shape_cast %34 : vector<1x8x32xf32> to vector<8x32xf32>
    %36 = vector.shape_cast %33 : vector<8x32xf32> to vector<1x8x32xf32>
    tpu.vector_store %arg10[%c0_21, %c0_22, %c0_23], %36 {strides = array<i32>} : memref<1x8x32xf32, #tpu.memory_space<vmem>>, vector<1x8x32xf32>,
    return
  }
  func.func @transform_0(%arg0: i32, %arg1: i32) -> (i32, i32, i32) {
    %c0_i32 = arith.constant 0 : i32
    %c0_i32_0 = arith.constant 0 : i32
    return %arg0, %arg1, %c0_i32 : i32, i32, i32
  }
  func.func @transform_1(%arg0: i32, %arg1: i32) -> (i32, i32, i32) {
    %c0_i32 = arith.constant 0 : i32
    %c0_i32_0 = arith.constant 0 : i32
    %c0_i32_1 = arith.constant 0 : i32
    return %arg0, %c0_i32, %c0_i32_0 : i32, i32, i32
  }
  func.func @transform_2(%arg0: i32, %arg1: i32) -> (i32, i32) {
    %c0_i32 = arith.constant 0 : i32
    %c0_i32_0 = arith.constant 0 : i32
    %c0_i32_1 = arith.constant 0 : i32
    return %c0_i32, %c0_i32_0 : i32, i32
  }
  func.func @transform_3(%arg0: i32, %arg1: i32) -> (i32, i32) {
    %c0_i32 = arith.constant 0 : i32
    %c0_i32_0 = arith.constant 0 : i32
    %c0_i32_1 = arith.constant 0 : i32
    return %c0_i32, %c0_i32_0 : i32, i32
  }
  func.func @transform_4(%arg0: i32, %arg1: i32) -> (i32, i32) {
    %c0_i32 = arith.constant 0 : i32
    %c0_i32_0 = arith.constant 0 : i32
    %c0_i32_1 = arith.constant 0 : i32
    return %c0_i32, %c0_i32_0 : i32, i32
  }
  func.func @transform_5(%arg0: i32, %arg1: i32) -> (i32, i32) {
    %c0_i32 = arith.constant 0 : i32
    %c0_i32_0 = arith.constant 0 : i32
    %c0_i32_1 = arith.constant 0 : i32
    return %c0_i32, %c0_i32_0 : i32, i32
  }
  func.func @transform_6(%arg0: i32, %arg1: i32) -> (i32, i32) {
    %c0_i32 = arith.constant 0 : i32
    %c0_i32_0 = arith.constant 0 : i32
    %c0_i32_1 = arith.constant 0 : i32
    return %c0_i32, %c0_i32_0 : i32, i32
  }
  func.func @transform_7(%arg0: i32, %arg1: i32) -> (i32, i32) {
    %c0_i32 = arith.constant 0 : i32
    %c0_i32_0 = arith.constant 0 : i32
    %c0_i32_1 = arith.constant 0 : i32
    return %c0_i32, %c0_i32_0 : i32, i32
  }
  func.func @transform_8(%arg0: i32, %arg1: i32) -> (i32, i32, i32) {
    %c0_i32 = arith.constant 0 : i32
    %c0_i32_0 = arith.constant 0 : i32
    return %arg0, %arg1, %c0_i32 : i32, i32, i32
  }
}

module attributes {stable_mosaic.version = 11 : i64} {
  func.func @_mha_kernel(%arg0: i32, %arg1: i32, %arg2: memref<1x8x32xbf16, #tpu.memory_space<vmem>>, %arg3: memref<1x16x32xbf16, #tpu.memory_space<vmem>>, %arg4: memref<32x32xbf16, #tpu.memory_space<vmem>>, %arg5: memref<1x32xf32, #tpu.memory_space<vmem>>, %arg6: memref<32x64xbf16, #tpu.memory_space<vmem>>, %arg7: memref<1x64xf32, #tpu.memory_space<vmem>>, %arg8: memref<32x32xbf16, #tpu.memory_space<vmem>>, %arg9: memref<1x32xf32, #tpu.memory_space<vmem>>, %arg10: memref<1x8x32xf32, #tpu.memory_space<vmem>>, %arg11: memref<16x32xbf16, #tpu.memory_space<vmem>>, %arg12: memref<16x32xbf16, #tpu.memory_space<vmem>>) attributes {dimension_semantics = [#tpu.dimension_semantics<parallel>, #tpu.dimension_semantics<arbitrary>], iteration_bounds = array<i64: 2, 1>, scalar_prefetch = 0 : i64, scratch_operands = 2 : i64, tpu.core_type = #tpu.core_type<tc>, window_params = [{transform_indices = @transform_0, window_bounds = array<i64: 1, 8, 32>}, {transform_indices = @transform_1, window_bounds = array<i64: 1, 16, 32>}, {pipeline_mode = #tpu.pipeline_mode<synchronous>, transform_indices = @transform_2, window_bounds = array<i64: 32, 32>}, {pipeline_mode = #tpu.pipeline_mode<synchronous>, transform_indices = @transform_3, window_bounds = array<i64: 1, 32>}, {pipeline_mode = #tpu.pipeline_mode<synchronous>, transform_indices = @transform_4, window_bounds = array<i64: 32, 64>}, {pipeline_mode = #tpu.pipeline_mode<synchronous>, transform_indices = @transform_5, window_bounds = array<i64: 1, 64>}, {pipeline_mode = #tpu.pipeline_mode<synchronous>, transform_indices = @transform_6, window_bounds = array<i64: 32, 32>}, {pipeline_mode = #tpu.pipeline_mode<synchronous>, transform_indices = @transform_7, window_bounds = array<i64: 1, 32>}, {transform_indices = @transform_8, window_bounds = array<i64: 1, 8, 32>}]} {
    %c0_i32 = arith.constant 0 : i32
    %0 = arith.cmpi eq, %arg1, %c0_i32 : i32
    %1 = arith.extui %0 : i1 to i32
    %c0_i32_0 = arith.constant 0 : i32
    %2 = arith.cmpi ne, %1, %c0_i32_0 : i32
    scf.if %2 {
      %c0_24 = arith.constant 0 : index
      %c0_25 = arith.constant 0 : index
      %c0_26 = arith.constant 0 : index
      %37 = vector.load %arg3[%c0_24, %c0_25, %c0_26] : memref<1x16x32xbf16, #tpu.memory_space<vmem>>, vector<1x16x32xbf16>
      %38 = vector.shape_cast %37 : vector<1x16x32xbf16> to vector<16x32xbf16>
      %c0_27 = arith.constant 0 : index
      %c0_28 = arith.constant 0 : index
      %39 = vector.load %arg6[%c0_27, %c0_28] : memref<32x64xbf16, #tpu.memory_space<vmem>>, vector<32x64xbf16>
      %cst_29 = arith.constant dense<0.000000e+00> : vector<16x64xf32>
      %40 = tpu.matmul %38, %39, %cst_29 {dimension_numbers = #tpu.dot_dimension_numbers<[1], [0], [0], [1], [0, 0, 1, 1], [], []>} : vector<16x32xbf16>, vector<32x64xbf16>, vector<16x64xf32> -> vector<16x64xf32>
      %c0_30 = arith.constant 0 : index
      %c0_31 = arith.constant 0 : index
      %41 = vector.load %arg7[%c0_30, %c0_31] : memref<1x64xf32, #tpu.memory_space<vmem>>, vector<1x64xf32>
      %42 = vector.broadcast %41 : vector<1x64xf32> to vector<16x64xf32>
      %43 = arith.addf %40, %42 : vector<16x64xf32>
      %44 = vector.extract_strided_slice %43 {offsets = [0, 0], sizes = [16, 32], strides = [1, 1]} : vector<16x64xf32> to vector<16x32xf32>
      %45 = arith.truncf %44 : vector<16x32xf32> to vector<16x32xbf16>
      %c0_32 = arith.constant 0 : index
      %c0_33 = arith.constant 0 : index
      %46 = vector.load %arg11[%c0_32, %c0_33] : memref<16x32xbf16, #tpu.memory_space<vmem>>, vector<16x32xbf16>
      tpu.vector_store %arg11[%c0_32, %c0_33], %45 {strides = array<i32>} : memref<16x32xbf16, #tpu.memory_space<vmem>>, vector<16x32xbf16>,
      %47 = vector.extract_strided_slice %43 {offsets = [0, 32], sizes = [16, 32], strides = [1, 1]} : vector<16x64xf32> to vector<16x32xf32>
      %48 = arith.truncf %47 : vector<16x32xf32> to vector<16x32xbf16>
      %c0_34 = arith.constant 0 : index
      %c0_35 = arith.constant 0 : index
      %49 = vector.load %arg12[%c0_34, %c0_35] : memref<16x32xbf16, #tpu.memory_space<vmem>>, vector<16x32xbf16>
      tpu.vector_store %arg12[%c0_34, %c0_35], %48 {strides = array<i32>} : memref<16x32xbf16, #tpu.memory_space<vmem>>, vector<16x32xbf16>,
    } else {
    }
    %c0 = arith.constant 0 : index
    %c0_1 = arith.constant 0 : index
    %c0_2 = arith.constant 0 : index
    %3 = vector.load %arg2[%c0, %c0_1, %c0_2] : memref<1x8x32xbf16, #tpu.memory_space<vmem>>, vector<1x8x32xbf16>
    %4 = vector.shape_cast %3 : vector<1x8x32xbf16> to vector<8x32xbf16>
    %c0_3 = arith.constant 0 : index
    %c0_4 = arith.constant 0 : index
    %5 = vector.load %arg4[%c0_3, %c0_4] : memref<32x32xbf16, #tpu.memory_space<vmem>>, vector<32x32xbf16>
    %cst = arith.constant dense<0.000000e+00> : vector<8x32xf32>
    %6 = tpu.matmul %4, %5, %cst {dimension_numbers = #tpu.dot_dimension_numbers<[1], [0], [0], [1], [0, 0, 1, 1], [], []>} : vector<8x32xbf16>, vector<32x32xbf16>, vector<8x32xf32> -> vector<8x32xf32>
    %c0_5 = arith.constant 0 : index
    %c0_6 = arith.constant 0 : index
    %7 = vector.load %arg5[%c0_5, %c0_6] : memref<1x32xf32, #tpu.memory_space<vmem>>, vector<1x32xf32>
    %8 = vector.broadcast %7 : vector<1x32xf32> to vector<8x32xf32>
    %9 = arith.addf %6, %8 : vector<8x32xf32>
    %cst_7 = arith.constant 0.176776692 : f32
    %10 = vector.broadcast %cst_7 : f32 to vector<8x32xf32>
    %11 = arith.mulf %9, %10 : vector<8x32xf32>
    %12 = arith.truncf %11 : vector<8x32xf32> to vector<8x32xbf16>
    %c0_8 = arith.constant 0 : index
    %c0_9 = arith.constant 0 : index
    %13 = vector.load %arg11[%c0_8, %c0_9] : memref<16x32xbf16, #tpu.memory_space<vmem>>, vector<16x32xbf16>
    %c0_10 = arith.constant 0 : index
    %c0_11 = arith.constant 0 : index
    %14 = vector.load %arg12[%c0_10, %c0_11] : memref<16x32xbf16, #tpu.memory_space<vmem>>, vector<16x32xbf16>
    %cst_12 = arith.constant dense<0.000000e+00> : vector<8x16xf32>
    %15 = tpu.matmul %12, %13, %cst_12 {dimension_numbers = #tpu.dot_dimension_numbers<[1], [1], [0], [0], [0, 0, 1, 0], [], []>} : vector<8x32xbf16>, vector<16x32xbf16>, vector<8x16xf32> -> vector<8x16xf32>
    %cst_13 = arith.constant dense<0xFF800000> : vector<8xf32>
    %16 = vector.multi_reduction <maximumf>, %15, %cst_13 [1] : vector<8x16xf32> to vector<8xf32>
    %17 = vector.shape_cast %16 : vector<8xf32> to vector<8x1xf32>
    %18 = vector.broadcast %17 : vector<8x1xf32> to vector<8x16xf32>
    %19 = arith.subf %15, %18 : vector<8x16xf32>
    %20 = math.exp %19 : vector<8x16xf32>
    %cst_14 = arith.constant dense<0.000000e+00> : vector<8xf32>
    %21 = vector.multi_reduction <add>, %20, %cst_14 [1] : vector<8x16xf32> to vector<8xf32>
    %22 = vector.shape_cast %21 : vector<8xf32> to vector<8x1xf32>
    %23 = arith.truncf %20 : vector<8x16xf32> to vector<8x16xbf16>
    %cst_15 = arith.constant dense<0.000000e+00> : vector<8x32xf32>
    %24 = tpu.matmul %23, %14, %cst_15 {dimension_numbers = #tpu.dot_dimension_numbers<[1], [0], [0], [1], [0, 0, 1, 1], [], []>} : vector<8x16xbf16>, vector<16x32xbf16>, vector<8x32xf32> -> vector<8x32xf32>
    %25 = tpu.reciprocal %22 {approx = true} : vector<8x1xf32> -> vector<8x1xf32>
    %26 = vector.broadcast %25 : vector<8x1xf32> to vector<8x32xf32>
    %27 = arith.mulf %24, %26 : vector<8x32xf32>
    %28 = arith.truncf %27 : vector<8x32xf32> to vector<8x32xbf16>
    %c0_16 = arith.constant 0 : index
    %c0_17 = arith.constant 0 : index
    %29 = vector.load %arg8[%c0_16, %c0_17] : memref<32x32xbf16, #tpu.memory_space<vmem>>, vector<32x32xbf16>
    %cst_18 = arith.constant dense<0.000000e+00> : vector<8x32xf32>
    %30 = tpu.matmul %28, %29, %cst_18 {dimension_numbers = #tpu.dot_dimension_numbers<[1], [0], [0], [1], [0, 0, 1, 1], [], []>} : vector<8x32xbf16>, vector<32x32xbf16>, vector<8x32xf32> -> vector<8x32xf32>
    %c0_19 = arith.constant 0 : index
    %c0_20 = arith.constant 0 : index
    %31 = vector.load %arg9[%c0_19, %c0_20] : memref<1x32xf32, #tpu.memory_space<vmem>>, vector<1x32xf32>
    %32 = vector.broadcast %31 : vector<1x32xf32> to vector<8x32xf32>
    %33 = arith.addf %30, %32 : vector<8x32xf32>
    %c0_21 = arith.constant 0 : index
    %c0_22 = arith.constant 0 : index
    %c0_23 = arith.constant 0 : index
    %34 = vector.load %arg10[%c0_21, %c0_22, %c0_23] : memref<1x8x32xf32, #tpu.memory_space<vmem>>, vector<1x8x32xf32>
    %35 = vector.shape_cast %34 : vector<1x8x32xf32> to vector<8x32xf32>
    %36 = vector.shape_cast %33 : vector<8x32xf32> to vector<1x8x32xf32>
    tpu.vector_store %arg10[%c0_21, %c0_22, %c0_23], %36 {strides = array<i32>} : memref<1x8x32xf32, #tpu.memory_space<vmem>>, vector<1x8x32xf32>,
    return
  }
  func.func @transform_0(%arg0: i32, %arg1: i32) -> (i32, i32, i32) {
    %c0_i32 = arith.constant 0 : i32
    %c0_i32_0 = arith.constant 0 : i32
    return %arg0, %arg1, %c0_i32 : i32, i32, i32
  }
  func.func @transform_1(%arg0: i32, %arg1: i32) -> (i32, i32, i32) {
    %c0_i32 = arith.constant 0 : i32
    %c0_i32_0 = arith.constant 0 : i32
    %c0_i32_1 = arith.constant 0 : i32
    return %arg0, %c0_i32, %c0_i32_0 : i32, i32, i32
  }
  func.func @transform_2(%arg0: i32, %arg1: i32) -> (i32, i32) {
    %c0_i32 = arith.constant 0 : i32
    %c0_i32_0 = arith.constant 0 : i32
    %c0_i32_1 = arith.constant 0 : i32
    return %c0_i32, %c0_i32_0 : i32, i32
  }
  func.func @transform_3(%arg0: i32, %arg1: i32) -> (i32, i32) {
    %c0_i32 = arith.constant 0 : i32
    %c0_i32_0 = arith.constant 0 : i32
    %c0_i32_1 = arith.constant 0 : i32
    return %c0_i32, %c0_i32_0 : i32, i32
  }
  func.func @transform_4(%arg0: i32, %arg1: i32) -> (i32, i32) {
    %c0_i32 = arith.constant 0 : i32
    %c0_i32_0 = arith.constant 0 : i32
    %c0_i32_1 = arith.constant 0 : i32
    return %c0_i32, %c0_i32_0 : i32, i32
  }
  func.func @transform_5(%arg0: i32, %arg1: i32) -> (i32, i32) {
    %c0_i32 = arith.constant 0 : i32
    %c0_i32_0 = arith.constant 0 : i32
    %c0_i32_1 = arith.constant 0 : i32
    return %c0_i32, %c0_i32_0 : i32, i32
  }
  func.func @transform_6(%arg0: i32, %arg1: i32) -> (i32, i32) {
    %c0_i32 = arith.constant 0 : i32
    %c0_i32_0 = arith.constant 0 : i32
    %c0_i32_1 = arith.constant 0 : i32
    return %c0_i32, %c0_i32_0 : i32, i32
  }
  func.func @transform_7(%arg0: i32, %arg1: i32) -> (i32, i32) {
    %c0_i32 = arith.constant 0 : i32
    %c0_i32_0 = arith.constant 0 : i32
    %c0_i32_1 = arith.constant 0 : i32
    return %c0_i32, %c0_i32_0 : i32, i32
  }
  func.func @transform_8(%arg0: i32, %arg1: i32) -> (i32, i32, i32) {
    %c0_i32 = arith.constant 0 : i32
    %c0_i32_0 = arith.constant 0 : i32
    return %arg0, %arg1, %c0_i32 : i32, i32, i32
  }
}

</mosaic_0001>

<bundles_post_ra>
// kernel: tpu_custom_call.1
= control target key start
LH: loop header
LB: loop body
LE: loop exit
PB: predicated region body
PF: predicated region fallthrough
CT: control target
= control target key end

     0   :  { %s1688_s0 = inlined_call_operand.hbm [shape: bf16[2,8,32], index: 0, kind: input, shape index: {}]   ;;  %s1689_s1 = inlined_call_operand.hbm [shape: bf16[2,16,32], index: 1, kind: input, shape index: {}]   ;;  %s1690_s2 = inlined_call_operand.hbm [shape: bf16[32,32], index: 2, kind: input, shape index: {}]   ;;  %s1691_s3 = inlined_call_operand.vmem [shape: f32[1,32], index: 3, kind: input, shape index: {}]   ;;  %s1692_s4 = inlined_call_operand.hbm [shape: bf16[32,64], index: 4, kind: input, shape index: {}]   ;;  %s1693_s5 = inlined_call_operand.vmem [shape: f32[1,64], index: 5, kind: input, shape index: {}]   ;;  %s1694_s6 = inlined_call_operand.vmem [shape: bf16[32,32], index: 6, kind: input, shape index: {}]   ;;  %s1695_s7 = inlined_call_operand.vmem [shape: f32[1,32], index: 7, kind: input, shape index: {}]   ;;  %s1696_s8 = inlined_call_operand.hbm [shape: f32[2,8,32], index: 8, kind: output, shape index: {}]  }
   0x1   :  { %1705 = sst [smem:[#allocation21_spill]] %s1688_s0 }
   0x2   :  { %1706 = sst [smem:[#allocation22_spill]] %s1690_s2 }
   0x3   :  { %1707 = sst [smem:[#allocation23_spill]] %s1692_s4 }
   0x4   :  { %13 = vsyncpa [#allocation5], 0 }
   0x5   :  { %15 = vsyncpa [#allocation5 + $0x1], 0 }
   0x6   :  { %16 = vsyncpa [#allocation8], 0 }
   0x7   :  { %18 = vsyncpa [#allocation8 + $0x1], 0 }
   0x8   :  { %19 = vsyncpa [#allocation11], 0 }
   0x9   :  { %20 = vsyncpa [#allocation6], 0 }
   0xa   :  { %22 = vsyncpa [#allocation6 + $0x1], 0  ;;  %s1330_s27 = smov 0   ;;  %s1332_s28 = smov 0  }
   0xb   :  { %s1334_s29 = smov 0   ;;  %s1336_s30 = smov 0  }
   0xc   :  { %s1338_s9 = smov 0   ;;  %s1340_s10 = smov 0  }
   0xd LB: > { %1708 = sst [smem:[#allocation18_spill]] %s1253_s27  ;;  %s1361_s11 = sadd.s32 4294967295, %s1273_s10   ;;  %s1273_s10 = sphi %s1340_s10, %s28_s10   ;;  %s1269_s9 = sphi %s1338_s9, %s1739_s9   ;;  %s1265_s30 = sphi %s1336_s30, %s1738_s30   ;;  %s1261_s29 = sphi %s1334_s29, %s1737_s29   ;;  %s1257_s28 = sphi %s1332_s28, %s1736_s28   ;;  %s1253_s27 = sphi %s1330_s27, %s1735_s27  }
   0xe   : > { %s874_s12 = sadd.s32 4294967294, %s1273_s10   ;;  %p62_p0 = scmp.ne.s32.totalorder %s1257_s28, %s1253_s27 }
   0xf   : > { %p1697_p1 = scmp.eq.s32.totalorder %s1361_s11, 0  ;;  %p246_p3 = scmp.eq.s32.totalorder %s874_s12, 1 }
  0x10   : > { %p875_p5 = scmp.ge.s32.totalorder %s1273_s10, 1  ;;  %p253_p7 = scmp.lt.s32.totalorder %s1273_s10, 3 }
  0x11   : > { %p1370_p4 = por %p1697_p1, %p62_p0  ;;  %p1375_p6 = por %p246_p3, %p62_p0 }
  0x12   : > { %p1380_p8 = pnand %p875_p5, %p253_p7  ;;  %s1275_s16 = smov [#allocation9]  }
  0x13   : > { %s1709_s13 = scalar_select %p1370_p4, 1, 0 }
  0x14   : > { %s1710_s14 = scalar_select %p1375_p6, 1, 0 }
  0x15   : > { %s265_s17 = sshll.u32 %s1275_s16, 4  ;;  %p973_p9 = pneg %p1380_p8  ;;  %s1384_s17 = int_to_ptr.vmem [resolvable:$true] %s265_s17 }
  0x16   : > { %1711 = sst [smem:[#allocation19_spill]] %s1710_s14  ;;  %s1276_s19 = smov [#allocation10]  }
  0x17   : > { %p1391_p11 = pnand %p973_p9, %p1697_p1  ;;  %s281_s20 = sshll.u32 %s1276_s19, 4  ;;  %s1395_s20 = int_to_ptr.vmem [resolvable:$true] %s281_s20 }
  0x18   : > { %s1714_s2 = sld [smem:[#allocation22_spill]] }
  0x19   : > { %p1065_p13 = pneg %p1391_p11 }
  0x1e   : > { %s1063_s23 = scalar_lea.hbm %s1714_s2, 256 }
  0x1f   : > { %p1064_p12 = scmp.ne.s32.totalorder %s1714_s2, %s1063_s23  ;;  %p1070_p5 = scmp.lt.u32.totalorder %s1063_s23, %s1714_s2 }
  0x21   : > { %p1066_p0 = pnand %p1065_p13, %p1064_p12 }
  0x23   : > { %p1067_p3 = pneg %p1066_p0 }
  0x25   : > { %p1072_p7 = pnand %p1070_p5, %p1067_p3 }
  0x27   : > { %1075 = shalt.err (!%p1072_p7)
}
  0x28   : > { %s1076_s16 = scalar_lea.vmem %s1384_s17, 256  ;;  %p1084_p2 = scmp.lt.s32.totalorder %s1384_s17, %s1384_s17 }
  0x29   : > { %p1077_p9 = scmp.ne.s32.totalorder %s1384_s17, %s1076_s16  ;;  %p1085_p12 = scmp.lt.s32.totalorder %s1076_s16, %s1076_s16 }
  0x2b   : > { %p1079_p10 = pnand %p1077_p9, %p1065_p13  ;;  %p1086_p0 = por %p1085_p12, %p1084_p2 }
  0x2d   : > { %p1080_p1 = pneg %p1079_p10 }
  0x2f   : > { %p1087_p6 = pnand %p1086_p0, %p1080_p1 }
  0x31   : > { %1090 = shalt.err (!%p1087_p6)
}
  0x32   : > { %s1700_s19 = smov 64   ;;  %s1701_s21 = smov 4  }
  0x33   : > { %976 = dma.hbm_to_vmem [thread:$0]  (!%p1391_p11), %s1714_s2, 256, %s1384_s17, [#allocation8], %s1700_s19, %s1700_s19, %s1701_s21  }
  0x34   : > { %s1715_s4 = sld [smem:[#allocation23_spill]] }
  0x3a   : > { %s1091_s26 = scalar_lea.hbm %s1715_s4, 256 }
  0x3b   : > { %p1092_p1 = scmp.ne.s32.totalorder %s1715_s4, %s1091_s26  ;;  %p1098_p10 = scmp.lt.u32.totalorder %s1091_s26, %s1715_s4 }
  0x3d   : > { %p1094_p2 = pnand %p1092_p1, %p1065_p13 }
  0x3f   : > { %p1095_p6 = pneg %p1094_p2 }
  0x41   : > { %p1100_p3 = pnand %p1098_p10, %p1095_p6 }
  0x43   : > { %1103 = shalt.err (!%p1100_p3)
}
  0x44   : > { %s1104_s17 = scalar_lea.vmem %s1395_s20, 256  ;;  %p1112_p12 = scmp.lt.s32.totalorder %s1395_s20, %s1395_s20 }
  0x45   : > { %p1105_p5 = scmp.ne.s32.totalorder %s1395_s20, %s1104_s17  ;;  %p1113_p0 = scmp.lt.s32.totalorder %s1104_s17, %s1104_s17 }
  0x47   : > { %p1107_p7 = pnand %p1105_p5, %p1065_p13  ;;  %p1114_p1 = por %p1113_p0, %p1112_p12 }
  0x49   : > { %p1108_p9 = pneg %p1107_p7 }
  0x4b   : > { %p1115_p2 = pnand %p1114_p1, %p1108_p9 }
  0x4d   : > { %1118 = shalt.err (!%p1115_p2)
}
  0x4e   : > { %979 = dma.hbm_to_vmem [thread:$0]  (!%p1391_p11), %s1715_s4, 256, %s1395_s20, [#allocation11], %s1700_s19, %s1700_s19, %s1701_s21  }
  0x4f   : > { %s40_s18 = sadd.s32 1, %s1269_s9  ;;  %s49_s22 = sadd.s32 1, %s1261_s29 }
  0x50   : > { %p42_p13 = scmp.ge.s32.totalorder %s40_s18, 2  ;;  %p56_p6 = scmp.ne.s32.totalorder %s1261_s29, %s1257_s28 }
  0x51   : > { %p57_p10 = scmp.eq.s32.totalorder %s1273_s10, 0  ;;  %p993_p3 = scmp.lt.s32.totalorder %s1273_s10, 2 }
  0x52   : > { %s1741_s18 = smov (%p42_p13, %s40_s18), 0  ;;  %p1717_p7 = scmp.eq.s32.totalorder %s1361_s11, 1 }
  0x53   : > { %1716 = sst [smem:[#allocation20_spill]] %s1741_s18  ;;  %p58_p5 = por %p57_p10, %p56_p6 }
  0x54   : > { %p1465_p9 = por %p1717_p7, %p56_p6  ;;  %s44_s24 = ssub.s32 %s1269_s9, %s1741_s18 }
  0x55   : > { %s1472_s25 = sand.u32 1, %s1261_s29   ;;  %p47_p11 = scmp.eq.s32.totalorder %s44_s24, 0 }
  0x56   : > { %s1718_s23 = scalar_select %p1465_p9, 1, 0 }
  0x57   : > { %s879_s20 = sshll.u32 %s1472_s25, 2  ;;  %s880_s26 = sshll.u32 %s1269_s9, 6 }
  0x58   : > { %s1477_s12 = scalar_select %p47_p11, %s1261_s29, %s49_s22  }
  0x59   : > { %s1719_s0 = sld [smem:[#allocation21_spill]]  ;;  %s308_s14 = scalar_lea.vmem [#allocation4], %s879_s20 }
  0x5a   : > { %s316_s19 = sshll.u32 %s308_s14, 4  ;;  %p1486_p12 = pnand %p993_p3, %p58_p5  ;;  %s1490_s19 = int_to_ptr.vmem [resolvable:$true] %s316_s19 }
  0x5b   : > { %s305_s24 = scalar_lea.sflag [#allocation5], %s1472_s25 }
  0x5c   : > { %p1121_p1 = pneg %p1486_p12 }
  0x5f   : > { %s1482_s27 = scalar_lea.hbm %s1719_s0, %s880_s26  ;;  %s1124_s17 = scalar_lea.hbm %s1719_s0, 128 }
  0x60   : > { %s1119_s16 = scalar_lea.hbm %s1482_s27, 64  ;;  %p1125_p6 = scmp.lt.u32.totalorder %s1482_s27, %s1719_s0 }
  0x61   : > { %p1120_p0 = scmp.ne.s32.totalorder %s1482_s27, %s1119_s16  ;;  %p1126_p10 = scmp.lt.u32.totalorder %s1124_s17, %s1119_s16 }
  0x62   : > { %p1128_p5 = scmp.lt.u32.totalorder %s1119_s16, %s1482_s27 }
  0x63   : > { %p1122_p2 = pnand %p1121_p1, %p1120_p0  ;;  %p1127_p3 = por %p1126_p10, %p1125_p6 }
  0x65   : > { %p1123_p13 = pneg %p1122_p2  ;;  %p1129_p7 = por %p1128_p5, %p1127_p3 }
  0x67   : > { %p1130_p11 = pnand %p1129_p7, %p1123_p13 }
  0x69   : > { %1133 = shalt.err (!%p1130_p11)
}
  0x6a   : > { %s1134_s22 = scalar_lea.vmem %s1490_s19, 64  ;;  %s1279_s20 = smov [#allocation4]  }
  0x6b   : > { %p1135_p0 = scmp.ne.s32.totalorder %s1490_s19, %s1134_s22  ;;  %s1139_s26 = sshll.u32 %s1279_s20, 4  ;;  %s1140_s26 = int_to_ptr.vmem [resolvable:$false] %s1139_s26 }
  0x6c   : > { %s1141_s2 = scalar_lea.vmem %s1140_s26, 128  ;;  %p1142_p4 = scmp.lt.s32.totalorder %s1490_s19, %s1140_s26 }
  0x6d   : > { %p1137_p2 = pnand %p1135_p0, %p1121_p1  ;;  %p1143_p6 = scmp.lt.s32.totalorder %s1141_s2, %s1134_s22 }
  0x6f   : > { %p1138_p9 = pneg %p1137_p2  ;;  %p1144_p10 = por %p1143_p6, %p1142_p4 }
  0x71   : > { %p1145_p3 = pnand %p1144_p10, %p1138_p9 }
  0x73   : > { %1148 = shalt.err (!%p1145_p3)
}
  0x74   : > { %983 = dma.hbm_to_vmem [thread:$0]  (!%p1486_p12), %s1482_s27, 64, %s1490_s19, %s305_s24  }
  0x75   : > { %s909_s16 = sshll.u32 %s1269_s9, 7  ;;  %s1721_s17 = sshll.u32 %s1472_s25, 3 }
  0x76   : > { %s327_s14 = scalar_lea.vmem [#allocation7], %s1721_s17  ;;  %s323_s26 = sand.u32 1, %s1273_s10  }
  0x77   : > { %s334_s20 = sshll.u32 %s327_s14, 4  ;;  %s1528_s0 = scalar_lea.hbm %s1689_s1, %s909_s16  ;;  %s1522_s20 = int_to_ptr.vmem [resolvable:$true] %s334_s20 }
  0x78   : > { %s1530_s4 = scalar_lea.sflag [#allocation8], %s323_s26  ;;  %s1149_s18 = scalar_lea.hbm %s1528_s0, 128 }
  0x79   : > { %p1150_p4 = scmp.ne.s32.totalorder %s1528_s0, %s1149_s18  ;;  %s1154_s27 = scalar_lea.hbm %s1689_s1, 256 }
  0x7a   : > { %p1155_p5 = scmp.lt.u32.totalorder %s1528_s0, %s1689_s1  ;;  %p1156_p7 = scmp.lt.u32.totalorder %s1154_s27, %s1149_s18 }
  0x7b   : > { %p1152_p9 = pnand %p1150_p4, %p1121_p1  ;;  %p1158_p0 = scmp.lt.u32.totalorder %s1149_s18, %s1528_s0 }
  0x7c   : > { %p1157_p11 = por %p1156_p7, %p1155_p5 }
  0x7d   : > { %p1153_p13 = pneg %p1152_p9 }
  0x7e   : > { %p1159_p2 = por %p1158_p0, %p1157_p11 }
  0x80   : > { %p1160_p6 = pnand %p1159_p2, %p1153_p13 }
  0x82   : > { %1163 = shalt.err (!%p1160_p6)
}
  0x83   : > { %s1164_s16 = scalar_lea.vmem %s1522_s20, 128  ;;  %s1280_s14 = smov [#allocation7]  }
  0x84   : > { %p1165_p10 = scmp.ne.s32.totalorder %s1522_s20, %s1164_s16  ;;  %s1169_s26 = sshll.u32 %s1280_s14, 4  ;;  %s1170_s26 = int_to_ptr.vmem [resolvable:$false] %s1169_s26 }
  0x85   : > { %s1171_s22 = scalar_lea.vmem %s1170_s26, 256  ;;  %p1172_p9 = scmp.lt.s32.totalorder %s1522_s20, %s1170_s26 }
  0x86   : > { %p1167_p3 = pnand %p1165_p10, %p1121_p1  ;;  %p1173_p5 = scmp.lt.s32.totalorder %s1171_s22, %s1164_s16 }
  0x88   : > { %p1168_p4 = pneg %p1167_p3  ;;  %p1174_p7 = por %p1173_p5, %p1172_p9 }
  0x8a   : > { %p1175_p11 = pnand %p1174_p7, %p1168_p4 }
  0x8c   : > { %1178 = shalt.err (!%p1175_p11)
}
  0x8d   : > { %s1722_s18 = smov 4   ;;  %s1723_s2 = smov 64  }
  0x8e   : > { %986 = dma.hbm_to_vmem [thread:$0]  (!%p1486_p12), %s1528_s0, 128, %s1522_s20, %s1530_s4, %s1723_s2, %s1723_s2, %s1722_s18  }
  0x8f   : > { %346 = sbr.rel (%p1380_p8) target bundleno = 1220 (0x4c4), region = 52  ;;  %s1562_s19 = sand.u32 (!%p1380_p8), 1, %s1257_s28  }
  0x90   : > { %s885_s25 = sshll.u32 (!%p1380_p8), %s1562_s19, 2  ;;  %s349_s27 = scalar_lea.sflag (!%p1380_p8), [#allocation5], %s1562_s19 }
  0x91   : > { %s1566_s24 = scalar_lea.vmem (!%p1380_p8), [#allocation4], %s885_s25  ;;  %p1724_p1 = scmp.ne.s32.totalorder (!%p1380_p8), %s1709_s13, 0 }
  0x96   : > { %1232 = dma.done.wait (%p1724_p1), %s349_s27, 64  }
  0x97   : > { %1234 = vsyncadd (%p1724_p1), %s349_s27, 4294967232  ;;  %s357_s0 = sand.u32 1, %s1361_s11   ;;  %s886_s4 = sshll.u32 %s1562_s19, 3 }
  0x98   : > { %s358_s15 = scalar_lea.sflag [#allocation8], %s357_s0  ;;  %s361_s21 = scalar_lea.vmem [#allocation7], %s886_s4 }
  0x99   : > { %1236 = dma.done.wait (%p1724_p1), %s358_s15, 128  }
  0x9a   : > { %1238 = vsyncadd (%p1724_p1), %s358_s15, 4294967168  ;;  %p1725_p8 = scmp.eq.s32.totalorder %s1361_s11, 0 }
  0x9c   : > { %1240 = dma.done.wait (%p1725_p8), [#allocation8], 256   ;;  %p1726_p12 = pmov %p1725_p8 }
  0x9d   : > { %p1727_p13 = pmov %p1725_p8 }
  0x9e   : > { %1242 = vsyncadd (%p1726_p12), [#allocation8], 4294967040 }
  0x9f   : > { %1244 = dma.done.wait (%p1727_p13), [#allocation11], 256   ;;  %p1728_p0 = pmov %p1725_p8 }
  0xa0   : > { %v1281_v0 = vmov 0.0   ;;  %vm1282_vm0 = vmmov 0   ;;  %v1052_v1 = vld [vmem:[#allocation10] sm:$0xff]   ;;  %v1053_v2 = vld [vmem:[#allocation10 + $0x8] sm:$0xff]   ;;  %v1055_v3 = vld [vmem:[#allocation9] sm:$0xff]   ;;  %vm442_vm1 = vcmask 261120  }
  0xa1   : > { %1246 = vsyncadd (%p1728_p0), [#allocation11], 4294967040  ;;  %923 = vmatprep.subr.bf16.mxu0 %v1281_v0  ;;  %927 = vmatprep.mubr.msk.bf16.mxu0 %vm1282_vm0, %v1281_v0  ;;  %v1054_v4 = vld [vmem:[%s361_s21] sm:$0xff]   ;;  %v1056_v5 = vld [vmem:[#allocation9 + $0x8] sm:$0xff]   ;;  %vm612_vm2 = vcmask 130048   ;;  %s1283_s16 = smov 96  }
  0xa2   : > { %931 = vmatprep.subr.bf16.mxu1 %v1281_v0  ;;  %935 = vmatprep.mubr.msk.bf16.mxu1 %vm1282_vm0, %v1281_v0  ;;  %v494_v6 = vld [vmem:[%s1566_s24] sm:$0xf]  ;;  %v1058_v39 = vld [vmem:[%s1694_s6 + $0x8] sm:$0xff]   ;;  %s906_s27 = sshll.u32 %s1265_s30, 7  ;;  %s406_s24 = scalar_lea.vmem [#allocation12], %s886_s4 }
  0xa3   : > { %924 = vmatpush3.bf16.msra.mxu0 %v1052_v1  ;;  %932 = vmatpush3.bf16.msra.mxu1 %v1055_v3  ;;  %v890_v7 = vld [vmem:[%s1693_s5] ss:$0 sm:$0xff]  ;;  %s751_s0 = sshll.u32 %s406_s24, 4  ;;  %s1638_s11 = scalar_lea.hbm %s1696_s8, %s906_s27  ;;  %s1640_s0 = int_to_ptr.vmem [resolvable:$true] %s751_s0 }
  0xa4   : > { %925 = vmatprep.subr.bf16.mxu0 %v1281_v0  ;;  %933 = vmatprep.subr.bf16.mxu1 %v1281_v0  ;;  %v895_v19 = vld [vmem:[%s1691_s3] ss:$0 sm:$0xff]  ;;  %s737_s30 = scalar_lea.sflag [#allocation6], %s1562_s19  ;;  %s1179_s4 = scalar_lea.vmem %s1640_s0, 128 }
  0xa5   : > { %v1057_v38 = vld [vmem:[%s1694_s6] sm:$0xff]   ;;  %p1180_p2 = scmp.ne.s32.totalorder %s1640_s0, %s1179_s4  ;;  %p1729_p6 = scmp.ne.s32.totalorder %s1718_s23, 0 }
  0xa6   : > { %v901_v48 = vld [vmem:[%s1695_s7] ss:$0 sm:$0xff]  ;;  %s1284_s13 = smov [#allocation12]  }
  0xa7   : > { %926 = vmatpush3.bf16.msra.mxu0 %v1053_v2  ;;  %934 = vmatpush3.bf16.msra.mxu1 %v1056_v5  ;;  %p1181_p10 = pnand %p1180_p2, %p1729_p6  ;;  %s1183_s20 = sshll.u32 %s1284_s13, 4  ;;  %s1184_s20 = int_to_ptr.vmem [resolvable:$false] %s1183_s20 }
  0xa8   : > { %939 = vmatprep.subr.bf16.mxu0 %v1281_v0  ;;  %945 = vmatprep.subr.bf16.mxu1 %v1281_v0  ;;  %s1185_s17 = scalar_lea.vmem %s1184_s20, 256  ;;  %p1186_p4 = scmp.lt.s32.totalorder %s1640_s0, %s1184_s20 }
  0xa9   : > { %p1182_p3 = pneg %p1181_p10  ;;  %p1187_p9 = scmp.lt.s32.totalorder %s1185_s17, %s1179_s4 }
  0xaa   : > { %928 = vmatmul.mubr.msk.bf16.vlgmr.msra.gmra.mrb[0].mxu0 %vm442_vm1, %v1054_v4  ;;  %936 = vmatmul.mubr.msk.bf16.vlgmr.msra.gmra.mrb[0].mxu1 %vm442_vm1, %v494_v6 }
  0xab   : > { %941 = vmatprep.mubr.msk.bf16.mxu0 %vm1282_vm0, %v1281_v0  ;;  %947 = vmatprep.mubr.msk.bf16.mxu1 %vm1282_vm0, %v1281_v0  ;;  %p1188_p5 = por %p1187_p9, %p1186_p4 }
  0xad   : > { %p1189_p7 = pnand %p1188_p5, %p1182_p3 }
 0x17d   : > { %v480_v8 = vpop.f32.mrb[0].mxu0  ;;  %v556_v14 = vpop.f32.mrb[0].mxu1 }
 0x17e   : > { %v929_v9 = vpop.f32.mrb[1].mxu0  ;;  %v481_v11 = vadd.f32 %v890_v7, %v480_v8  ;;  %v937_v15 = vpop.f32.mrb[1].mxu1  ;;  %v557_v20 = vadd.f32 %v895_v19, %v556_v14 }
 0x17f   : > { %v483_v10 = vpop.f32.mrb[2].mxu0  ;;  %v559_v17 = vpop.f32.mrb[2].mxu1 }
 0x180   : > { %v484_v12 = vadd.f32 %v890_v7, %v483_v10  ;;  %v930_v13 = vpop.f32.mrb[3].mxu0  ;;  %v938_v18 = vpop.f32.mrb[3].mxu1  ;;  %v562_v22 = vmul.f32 0.17677669, %v557_v20 }
 0x182   : > { %v487_v16 = vpack.c.bf16 %v484_v12, %v481_v11  ;;  %v563_v24 = vpack.c.bf16 %v562_v22, %v562_v22 }
 0x184   : > { %488 = vst.msk [vmem:[#allocation2] sm:$0xff] %vm442_vm1, %v487_v16 }
 0x18b   : > { %v564_v21 = vld [vmem:[#allocation2] sm:$0xff] }
 0x18c   : > { %v570_v23 = vsel %vm442_vm1, %v564_v21, 0 }
 0x18d   : > { %940 = vmatpush3.bf16.xpose.msra.mxu0 %v570_v23 }
 0x18e   : > { %951 = vmatprep.subr.bf16.mxu0 %v1281_v0 }
 0x194   : > { %942 = vmatmul.mubr.msk.bf16.vlgmr.msra.gmra.mrb[4].mxu0 %vm442_vm1, %v563_v24 }
 0x195   : > { %955 = vmatprep.mubr.msk.bf16.mxu0 %vm1282_vm0, %v1281_v0  ;;  %952 = vmatpush3.bf16.msra.mxu0 %v1057_v38 }
 0x196   : > { %953 = vmatprep.subr.bf16.mxu0 %v1281_v0 }
 0x199   : > { %954 = vmatpush3.bf16.msra.mxu0 %v1058_v39 }
 0x267   : > { %v606_v25 = vpop.f32.mrb[4].mxu0 }
 0x268   : > { %v943_v26 = vpop.f32.mrb[5].mxu0  ;;  %v613_v27 = vsel %vm612_vm2, %v606_v25, -inf }
 0x269   : > { %614 = vmax.xlane.f32.xlu0 %v613_v27  ;;  %v609_v28 = vpop.f32.mrb[6].mxu0 }
 0x26a   : > { %v944_v29 = vpop.f32.mrb[7].mxu0 }
 0x27f   : > { %490 = vrot.lane.b32.xlu0 %v487_v16, %s1283_s16 }
 0x2f6   : > { %v615_v30 = vpop.xlane.xlu0 %614 }
 0x2f7   : > { %v616_v31 = vsub.f32 %v606_v25, %v615_v30 }
 0x2f9   : > { %v617_v32 = vmul.f32 1.442695, %v616_v31 }
 0x2fa   : > { %v491_v33 = vpop.permute.xlu0 %490 }
 0x2fb   : > { %1059 = vpow2.f32 %v617_v32  ;;  %493 = vst.msk [vmem:[#allocation3] sm:$0xff] %vm442_vm1, %v491_v33 }
 0x302   : > { %v565_v34 = vld [vmem:[#allocation3] sm:$0xff] }
 0x303   : > { %946 = vmatpush3.bf16.msra.mxu1 %v565_v34 }
 0x305   : > { %v1060_v35 = vpop.eup %1059 }
 0x306   : > { %v619_v36 = vsel %vm612_vm2, %v1060_v35, 0.0  ;;  %v622_v37 = vpack.c.bf16 %v1060_v35, %v1060_v35 }
 0x307   : > { %620 = vadd.xlane.f32.xlu1 %v619_v36 }
 0x308   : > { %948 = vmatmul.mubr.msk.bf16.vlgmr.msra.gmra.mrb[4].mxu1 %vm612_vm2, %v622_v37 }
 0x394   : > { %v621_v40 = vpop.xlane.xlu1 %620 }
 0x395   : > { %1061 = vrcp.f32 %v621_v40 }
 0x39f   : > { %v1062_v41 = vpop.eup %1061 }
 0x3db   : > { %v660_v42 = vpop.f32.mrb[4].mxu1 }
 0x3dc   : > { %v667_v43 = vmul.f32 %v1062_v41, %v660_v42  ;;  %v949_v44 = vpop.f32.mrb[5].mxu1 }
 0x3dd   : > { %v663_v45 = vpop.f32.mrb[6].mxu1 }
 0x3de   : > { %v668_v46 = vpack.c.bf16 %v667_v43, %v667_v43  ;;  %v950_v47 = vpop.f32.mrb[7].mxu1 }
 0x3e0   : > { %956 = vmatmul.mubr.msk.bf16.vlgmr.msra.gmra.mrb[8].mxu0 %vm442_vm1, %v668_v46 }
 0x4b3   : > { %v729_v49 = vpop.f32.mrb[8].mxu0 }
 0x4b4   : > { %v730_v50 = vadd.f32 %v901_v48, %v729_v49  ;;  %v957_v51 = vpop.f32.mrb[9].mxu0 }
 0x4b5   : > { %v732_v52 = vpop.f32.mrb[10].mxu0 }
 0x4b6   : > { %v958_v53 = vpop.f32.mrb[11].mxu0  ;;  %735 = vst.msk [vmem:[%s406_s24] sm:$0xff] %vm442_vm1, %v730_v50 }
 0x4b7   : > { %1192 = shalt.err (!%p1189_p7)
}
 0x4b8   : > { %s1193_s19 = scalar_lea.hbm %s1638_s11, 128  ;;  %s1197_s26 = scalar_lea.hbm %s1696_s8, 256 }
 0x4b9   : > { %p1194_p11 = scmp.ne.s32.totalorder %s1638_s11, %s1193_s19  ;;  %p1198_p12 = scmp.lt.u32.totalorder %s1638_s11, %s1696_s8 }
 0x4ba   : > { %p1199_p13 = scmp.lt.u32.totalorder %s1197_s26, %s1193_s19  ;;  %p1201_p2 = scmp.lt.u32.totalorder %s1193_s19, %s1638_s11 }
 0x4bb   : > { %p1195_p1 = pnand %p1194_p11, %p1729_p6 }
 0x4bc   : > { %p1200_p0 = por %p1199_p13, %p1198_p12 }
 0x4bd   : > { %p1196_p8 = pneg %p1195_p1 }
 0x4be   : > { %p1202_p10 = por %p1201_p2, %p1200_p0 }
 0x4c0   : > { %p1203_p3 = pnand %p1202_p10, %p1196_p8 }
 0x4c2   : > { %1206 = shalt.err (!%p1203_p3)
}
 0x4c3   : > { %971 = dma.vmem_to_hbm [thread:$0]  (%p1729_p6), %s1640_s0, 128, %s1638_s11, %s737_s30  }
 0x4c4 PF: > { %s1730_s2 = sld [smem:[#allocation18_spill]]  ;;  %s1731_s25 = sld [smem:[#allocation19_spill]] }
 0x4c5   : > { %p1733_p9 = scmp.ge.s32.totalorder %s1273_s10, 2 }
 0x4ca   : > { %s763_s27 = sand.u32 1, %s1730_s2   ;;  %p1732_p4 = scmp.ne.s32.totalorder %s1731_s25, 0 }
 0x4cb   : > { %s764_s24 = scalar_lea.sflag [#allocation6], %s763_s27 }
 0x4cc   : > { %p988_p5 = pnand %p1733_p9, %p1732_p4 }
 0x4ce   : > { %1248 = dma.done.wait (!%p988_p5), %s764_s24, 128  }
 0x4cf   : > { %1250 = vsyncadd (!%p988_p5), %s764_s24, 4294967168  ;;  %s28_s10 = sadd.s32 1, %s1273_s10   ;;  %s1734_s23 = sld [smem:[#allocation20_spill]] }
 0x4d0   : > { %p25_p7 = scmp.ge.s32.totalorder %s28_s10, 4   ;;  %s1735_s27 = smov %s1257_s28 }
 0x4d1   : > { %s1736_s28 = smov %s1261_s29  ;;  %s1737_s29 = smov %s1477_s12 }
 0x4d2   : > { %s1738_s30 = smov %s1269_s9  ;;  %27 = sbr.rel (!%p25_p7) target bundleno = 13 (0xd), region = 122 }
 0x4d5   : > { %s1739_s9 = smov %s1734_s23 }
 0x4d9   :  { %769 = vsyncpa [#allocation5], 1 }
 0x4da   :  { %771 = vsyncpa [#allocation5 + $0x1], 1 }
 0x4db   :  { %772 = vsyncpa [#allocation8], 1 }
 0x4dc   :  { %774 = vsyncpa [#allocation8 + $0x1], 1 }
 0x4dd   :  { %775 = vsyncpa [#allocation11], 1 }
 0x4de   :  { %776 = vsyncpa [#allocation6], 1 }
 0x4df   :  { %778 = vsyncpa [#allocation6 + $0x1], 1 }

// kernel: tpu_custom_call.1
= control target key start
LH: loop header
LB: loop body
LE: loop exit
PB: predicated region body
PF: predicated region fallthrough
CT: control target
= control target key end

     0   :  { %s1688_s0 = inlined_call_operand.hbm [shape: bf16[2,8,32], index: 0, kind: input, shape index: {}]   ;;  %s1689_s1 = inlined_call_operand.hbm [shape: bf16[2,16,32], index: 1, kind: input, shape index: {}]   ;;  %s1690_s2 = inlined_call_operand.hbm [shape: bf16[32,32], index: 2, kind: input, shape index: {}]   ;;  %s1691_s3 = inlined_call_operand.vmem [shape: f32[1,32], index: 3, kind: input, shape index: {}]   ;;  %s1692_s4 = inlined_call_operand.hbm [shape: bf16[32,64], index: 4, kind: input, shape index: {}]   ;;  %s1693_s5 = inlined_call_operand.vmem [shape: f32[1,64], index: 5, kind: input, shape index: {}]   ;;  %s1694_s6 = inlined_call_operand.vmem [shape: bf16[32,32], index: 6, kind: input, shape index: {}]   ;;  %s1695_s7 = inlined_call_operand.vmem [shape: f32[1,32], index: 7, kind: input, shape index: {}]   ;;  %s1696_s8 = inlined_call_operand.hbm [shape: f32[2,8,32], index: 8, kind: output, shape index: {}]  }
   0x1   :  { %1705 = sst [smem:[#allocation21_spill]] %s1688_s0 }
   0x2   :  { %1706 = sst [smem:[#allocation22_spill]] %s1690_s2 }
   0x3   :  { %1707 = sst [smem:[#allocation23_spill]] %s1692_s4 }
   0x4   :  { %13 = vsyncpa [#allocation5], 0 }
   0x5   :  { %15 = vsyncpa [#allocation5 + $0x1], 0 }
   0x6   :  { %16 = vsyncpa [#allocation8], 0 }
   0x7   :  { %18 = vsyncpa [#allocation8 + $0x1], 0 }
   0x8   :  { %19 = vsyncpa [#allocation11], 0 }
   0x9   :  { %20 = vsyncpa [#allocation6], 0 }
   0xa   :  { %22 = vsyncpa [#allocation6 + $0x1], 0  ;;  %s1330_s27 = smov 0   ;;  %s1332_s28 = smov 0  }
   0xb   :  { %s1334_s29 = smov 0   ;;  %s1336_s30 = smov 0  }
   0xc   :  { %s1338_s9 = smov 0   ;;  %s1340_s10 = smov 0  }
   0xd LB: > { %1708 = sst [smem:[#allocation18_spill]] %s1253_s27  ;;  %s1361_s11 = sadd.s32 4294967295, %s1273_s10   ;;  %s1273_s10 = sphi %s1340_s10, %s28_s10   ;;  %s1269_s9 = sphi %s1338_s9, %s1739_s9   ;;  %s1265_s30 = sphi %s1336_s30, %s1738_s30   ;;  %s1261_s29 = sphi %s1334_s29, %s1737_s29   ;;  %s1257_s28 = sphi %s1332_s28, %s1736_s28   ;;  %s1253_s27 = sphi %s1330_s27, %s1735_s27  }
   0xe   : > { %s874_s12 = sadd.s32 4294967294, %s1273_s10   ;;  %p62_p0 = scmp.ne.s32.totalorder %s1257_s28, %s1253_s27 }
   0xf   : > { %p1697_p1 = scmp.eq.s32.totalorder %s1361_s11, 0  ;;  %p246_p3 = scmp.eq.s32.totalorder %s874_s12, 1 }
  0x10   : > { %p875_p5 = scmp.ge.s32.totalorder %s1273_s10, 1  ;;  %p253_p7 = scmp.lt.s32.totalorder %s1273_s10, 3 }
  0x11   : > { %p1370_p4 = por %p1697_p1, %p62_p0  ;;  %p1375_p6 = por %p246_p3, %p62_p0 }
  0x12   : > { %p1380_p8 = pnand %p875_p5, %p253_p7  ;;  %s1275_s16 = smov [#allocation9]  }
  0x13   : > { %s1709_s13 = scalar_select %p1370_p4, 1, 0 }
  0x14   : > { %s1710_s14 = scalar_select %p1375_p6, 1, 0 }
  0x15   : > { %s265_s17 = sshll.u32 %s1275_s16, 4  ;;  %p973_p9 = pneg %p1380_p8  ;;  %s1384_s17 = int_to_ptr.vmem [resolvable:$true] %s265_s17 }
  0x16   : > { %1711 = sst [smem:[#allocation19_spill]] %s1710_s14  ;;  %s1276_s19 = smov [#allocation10]  }
  0x17   : > { %p1391_p11 = pnand %p973_p9, %p1697_p1  ;;  %s281_s20 = sshll.u32 %s1276_s19, 4  ;;  %s1395_s20 = int_to_ptr.vmem [resolvable:$true] %s281_s20 }
  0x18   : > { %s1714_s2 = sld [smem:[#allocation22_spill]] }
  0x19   : > { %p1065_p13 = pneg %p1391_p11 }
  0x1e   : > { %s1063_s23 = scalar_lea.hbm %s1714_s2, 256 }
  0x1f   : > { %p1064_p12 = scmp.ne.s32.totalorder %s1714_s2, %s1063_s23  ;;  %p1070_p5 = scmp.lt.u32.totalorder %s1063_s23, %s1714_s2 }
  0x21   : > { %p1066_p0 = pnand %p1065_p13, %p1064_p12 }
  0x23   : > { %p1067_p3 = pneg %p1066_p0 }
  0x25   : > { %p1072_p7 = pnand %p1070_p5, %p1067_p3 }
  0x27   : > { %1075 = shalt.err (!%p1072_p7)
}
  0x28   : > { %s1076_s16 = scalar_lea.vmem %s1384_s17, 256  ;;  %p1084_p2 = scmp.lt.s32.totalorder %s1384_s17, %s1384_s17 }
  0x29   : > { %p1077_p9 = scmp.ne.s32.totalorder %s1384_s17, %s1076_s16  ;;  %p1085_p12 = scmp.lt.s32.totalorder %s1076_s16, %s1076_s16 }
  0x2b   : > { %p1079_p10 = pnand %p1077_p9, %p1065_p13  ;;  %p1086_p0 = por %p1085_p12, %p1084_p2 }
  0x2d   : > { %p1080_p1 = pneg %p1079_p10 }
  0x2f   : > { %p1087_p6 = pnand %p1086_p0, %p1080_p1 }
  0x31   : > { %1090 = shalt.err (!%p1087_p6)
}
  0x32   : > { %s1700_s19 = smov 64   ;;  %s1701_s21 = smov 4  }
  0x33   : > { %976 = dma.hbm_to_vmem [thread:$0]  (!%p1391_p11), %s1714_s2, 256, %s1384_s17, [#allocation8], %s1700_s19, %s1700_s19, %s1701_s21  }
  0x34   : > { %s1715_s4 = sld [smem:[#allocation23_spill]] }
  0x3a   : > { %s1091_s26 = scalar_lea.hbm %s1715_s4, 256 }
  0x3b   : > { %p1092_p1 = scmp.ne.s32.totalorder %s1715_s4, %s1091_s26  ;;  %p1098_p10 = scmp.lt.u32.totalorder %s1091_s26, %s1715_s4 }
  0x3d   : > { %p1094_p2 = pnand %p1092_p1, %p1065_p13 }
  0x3f   : > { %p1095_p6 = pneg %p1094_p2 }
  0x41   : > { %p1100_p3 = pnand %p1098_p10, %p1095_p6 }
  0x43   : > { %1103 = shalt.err (!%p1100_p3)
}
  0x44   : > { %s1104_s17 = scalar_lea.vmem %s1395_s20, 256  ;;  %p1112_p12 = scmp.lt.s32.totalorder %s1395_s20, %s1395_s20 }
  0x45   : > { %p1105_p5 = scmp.ne.s32.totalorder %s1395_s20, %s1104_s17  ;;  %p1113_p0 = scmp.lt.s32.totalorder %s1104_s17, %s1104_s17 }
  0x47   : > { %p1107_p7 = pnand %p1105_p5, %p1065_p13  ;;  %p1114_p1 = por %p1113_p0, %p1112_p12 }
  0x49   : > { %p1108_p9 = pneg %p1107_p7 }
  0x4b   : > { %p1115_p2 = pnand %p1114_p1, %p1108_p9 }
  0x4d   : > { %1118 = shalt.err (!%p1115_p2)
}
  0x4e   : > { %979 = dma.hbm_to_vmem [thread:$0]  (!%p1391_p11), %s1715_s4, 256, %s1395_s20, [#allocation11], %s1700_s19, %s1700_s19, %s1701_s21  }
  0x4f   : > { %s40_s18 = sadd.s32 1, %s1269_s9  ;;  %s49_s22 = sadd.s32 1, %s1261_s29 }
  0x50   : > { %p42_p13 = scmp.ge.s32.totalorder %s40_s18, 2  ;;  %p56_p6 = scmp.ne.s32.totalorder %s1261_s29, %s1257_s28 }
  0x51   : > { %p57_p10 = scmp.eq.s32.totalorder %s1273_s10, 0  ;;  %p993_p3 = scmp.lt.s32.totalorder %s1273_s10, 2 }
  0x52   : > { %s1741_s18 = smov (%p42_p13, %s40_s18), 0  ;;  %p1717_p7 = scmp.eq.s32.totalorder %s1361_s11, 1 }
  0x53   : > { %1716 = sst [smem:[#allocation20_spill]] %s1741_s18  ;;  %p58_p5 = por %p57_p10, %p56_p6 }
  0x54   : > { %p1465_p9 = por %p1717_p7, %p56_p6  ;;  %s44_s24 = ssub.s32 %s1269_s9, %s1741_s18 }
  0x55   : > { %s1472_s25 = sand.u32 1, %s1261_s29   ;;  %p47_p11 = scmp.eq.s32.totalorder %s44_s24, 0 }
  0x56   : > { %s1718_s23 = scalar_select %p1465_p9, 1, 0 }
  0x57   : > { %s879_s20 = sshll.u32 %s1472_s25, 2  ;;  %s880_s26 = sshll.u32 %s1269_s9, 6 }
  0x58   : > { %s1477_s12 = scalar_select %p47_p11, %s1261_s29, %s49_s22  }
  0x59   : > { %s1719_s0 = sld [smem:[#allocation21_spill]]  ;;  %s308_s14 = scalar_lea.vmem [#allocation4], %s879_s20 }
  0x5a   : > { %s316_s19 = sshll.u32 %s308_s14, 4  ;;  %p1486_p12 = pnand %p993_p3, %p58_p5  ;;  %s1490_s19 = int_to_ptr.vmem [resolvable:$true] %s316_s19 }
  0x5b   : > { %s305_s24 = scalar_lea.sflag [#allocation5], %s1472_s25 }
  0x5c   : > { %p1121_p1 = pneg %p1486_p12 }
  0x5f   : > { %s1482_s27 = scalar_lea.hbm %s1719_s0, %s880_s26  ;;  %s1124_s17 = scalar_lea.hbm %s1719_s0, 128 }
  0x60   : > { %s1119_s16 = scalar_lea.hbm %s1482_s27, 64  ;;  %p1125_p6 = scmp.lt.u32.totalorder %s1482_s27, %s1719_s0 }
  0x61   : > { %p1120_p0 = scmp.ne.s32.totalorder %s1482_s27, %s1119_s16  ;;  %p1126_p10 = scmp.lt.u32.totalorder %s1124_s17, %s1119_s16 }
  0x62   : > { %p1128_p5 = scmp.lt.u32.totalorder %s1119_s16, %s1482_s27 }
  0x63   : > { %p1122_p2 = pnand %p1121_p1, %p1120_p0  ;;  %p1127_p3 = por %p1126_p10, %p1125_p6 }
  0x65   : > { %p1123_p13 = pneg %p1122_p2  ;;  %p1129_p7 = por %p1128_p5, %p1127_p3 }
  0x67   : > { %p1130_p11 = pnand %p1129_p7, %p1123_p13 }
  0x69   : > { %1133 = shalt.err (!%p1130_p11)
}
  0x6a   : > { %s1134_s22 = scalar_lea.vmem %s1490_s19, 64  ;;  %s1279_s20 = smov [#allocation4]  }
  0x6b   : > { %p1135_p0 = scmp.ne.s32.totalorder %s1490_s19, %s1134_s22  ;;  %s1139_s26 = sshll.u32 %s1279_s20, 4  ;;  %s1140_s26 = int_to_ptr.vmem [resolvable:$false] %s1139_s26 }
  0x6c   : > { %s1141_s2 = scalar_lea.vmem %s1140_s26, 128  ;;  %p1142_p4 = scmp.lt.s32.totalorder %s1490_s19, %s1140_s26 }
  0x6d   : > { %p1137_p2 = pnand %p1135_p0, %p1121_p1  ;;  %p1143_p6 = scmp.lt.s32.totalorder %s1141_s2, %s1134_s22 }
  0x6f   : > { %p1138_p9 = pneg %p1137_p2  ;;  %p1144_p10 = por %p1143_p6, %p1142_p4 }
  0x71   : > { %p1145_p3 = pnand %p1144_p10, %p1138_p9 }
  0x73   : > { %1148 = shalt.err (!%p1145_p3)
}
  0x74   : > { %983 = dma.hbm_to_vmem [thread:$0]  (!%p1486_p12), %s1482_s27, 64, %s1490_s19, %s305_s24  }
  0x75   : > { %s909_s16 = sshll.u32 %s1269_s9, 7  ;;  %s1721_s17 = sshll.u32 %s1472_s25, 3 }
  0x76   : > { %s327_s14 = scalar_lea.vmem [#allocation7], %s1721_s17  ;;  %s323_s26 = sand.u32 1, %s1273_s10  }
  0x77   : > { %s334_s20 = sshll.u32 %s327_s14, 4  ;;  %s1528_s0 = scalar_lea.hbm %s1689_s1, %s909_s16  ;;  %s1522_s20 = int_to_ptr.vmem [resolvable:$true] %s334_s20 }
  0x78   : > { %s1530_s4 = scalar_lea.sflag [#allocation8], %s323_s26  ;;  %s1149_s18 = scalar_lea.hbm %s1528_s0, 128 }
  0x79   : > { %p1150_p4 = scmp.ne.s32.totalorder %s1528_s0, %s1149_s18  ;;  %s1154_s27 = scalar_lea.hbm %s1689_s1, 256 }
  0x7a   : > { %p1155_p5 = scmp.lt.u32.totalorder %s1528_s0, %s1689_s1  ;;  %p1156_p7 = scmp.lt.u32.totalorder %s1154_s27, %s1149_s18 }
  0x7b   : > { %p1152_p9 = pnand %p1150_p4, %p1121_p1  ;;  %p1158_p0 = scmp.lt.u32.totalorder %s1149_s18, %s1528_s0 }
  0x7c   : > { %p1157_p11 = por %p1156_p7, %p1155_p5 }
  0x7d   : > { %p1153_p13 = pneg %p1152_p9 }
  0x7e   : > { %p1159_p2 = por %p1158_p0, %p1157_p11 }
  0x80   : > { %p1160_p6 = pnand %p1159_p2, %p1153_p13 }
  0x82   : > { %1163 = shalt.err (!%p1160_p6)
}
  0x83   : > { %s1164_s16 = scalar_lea.vmem %s1522_s20, 128  ;;  %s1280_s14 = smov [#allocation7]  }
  0x84   : > { %p1165_p10 = scmp.ne.s32.totalorder %s1522_s20, %s1164_s16  ;;  %s1169_s26 = sshll.u32 %s1280_s14, 4  ;;  %s1170_s26 = int_to_ptr.vmem [resolvable:$false] %s1169_s26 }
  0x85   : > { %s1171_s22 = scalar_lea.vmem %s1170_s26, 256  ;;  %p1172_p9 = scmp.lt.s32.totalorder %s1522_s20, %s1170_s26 }
  0x86   : > { %p1167_p3 = pnand %p1165_p10, %p1121_p1  ;;  %p1173_p5 = scmp.lt.s32.totalorder %s1171_s22, %s1164_s16 }
  0x88   : > { %p1168_p4 = pneg %p1167_p3  ;;  %p1174_p7 = por %p1173_p5, %p1172_p9 }
  0x8a   : > { %p1175_p11 = pnand %p1174_p7, %p1168_p4 }
  0x8c   : > { %1178 = shalt.err (!%p1175_p11)
}
  0x8d   : > { %s1722_s18 = smov 4   ;;  %s1723_s2 = smov 64  }
  0x8e   : > { %986 = dma.hbm_to_vmem [thread:$0]  (!%p1486_p12), %s1528_s0, 128, %s1522_s20, %s1530_s4, %s1723_s2, %s1723_s2, %s1722_s18  }
  0x8f   : > { %346 = sbr.rel (%p1380_p8) target bundleno = 1220 (0x4c4), region = 52  ;;  %s1562_s19 = sand.u32 (!%p1380_p8), 1, %s1257_s28  }
  0x90   : > { %s885_s25 = sshll.u32 (!%p1380_p8), %s1562_s19, 2  ;;  %s349_s27 = scalar_lea.sflag (!%p1380_p8), [#allocation5], %s1562_s19 }
  0x91   : > { %s1566_s24 = scalar_lea.vmem (!%p1380_p8), [#allocation4], %s885_s25  ;;  %p1724_p1 = scmp.ne.s32.totalorder (!%p1380_p8), %s1709_s13, 0 }
  0x96   : > { %1232 = dma.done.wait (%p1724_p1), %s349_s27, 64  }
  0x97   : > { %1234 = vsyncadd (%p1724_p1), %s349_s27, 4294967232  ;;  %s357_s0 = sand.u32 1, %s1361_s11   ;;  %s886_s4 = sshll.u32 %s1562_s19, 3 }
  0x98   : > { %s358_s15 = scalar_lea.sflag [#allocation8], %s357_s0  ;;  %s361_s21 = scalar_lea.vmem [#allocation7], %s886_s4 }
  0x99   : > { %1236 = dma.done.wait (%p1724_p1), %s358_s15, 128  }
  0x9a   : > { %1238 = vsyncadd (%p1724_p1), %s358_s15, 4294967168  ;;  %p1725_p8 = scmp.eq.s32.totalorder %s1361_s11, 0 }
  0x9c   : > { %1240 = dma.done.wait (%p1725_p8), [#allocation8], 256   ;;  %p1726_p12 = pmov %p1725_p8 }
  0x9d   : > { %p1727_p13 = pmov %p1725_p8 }
  0x9e   : > { %1242 = vsyncadd (%p1726_p12), [#allocation8], 4294967040 }
  0x9f   : > { %1244 = dma.done.wait (%p1727_p13), [#allocation11], 256   ;;  %p1728_p0 = pmov %p1725_p8 }
  0xa0   : > { %v1281_v0 = vmov 0.0   ;;  %vm1282_vm0 = vmmov 0   ;;  %v1052_v1 = vld [vmem:[#allocation10] sm:$0xff]   ;;  %v1053_v2 = vld [vmem:[#allocation10 + $0x8] sm:$0xff]   ;;  %v1055_v3 = vld [vmem:[#allocation9] sm:$0xff]   ;;  %vm442_vm1 = vcmask 261120  }
  0xa1   : > { %1246 = vsyncadd (%p1728_p0), [#allocation11], 4294967040  ;;  %923 = vmatprep.subr.bf16.mxu0 %v1281_v0  ;;  %927 = vmatprep.mubr.msk.bf16.mxu0 %vm1282_vm0, %v1281_v0  ;;  %v1054_v4 = vld [vmem:[%s361_s21] sm:$0xff]   ;;  %v1056_v5 = vld [vmem:[#allocation9 + $0x8] sm:$0xff]   ;;  %vm612_vm2 = vcmask 130048   ;;  %s1283_s16 = smov 96  }
  0xa2   : > { %931 = vmatprep.subr.bf16.mxu1 %v1281_v0  ;;  %935 = vmatprep.mubr.msk.bf16.mxu1 %vm1282_vm0, %v1281_v0  ;;  %v494_v6 = vld [vmem:[%s1566_s24] sm:$0xf]  ;;  %v1058_v39 = vld [vmem:[%s1694_s6 + $0x8] sm:$0xff]   ;;  %s906_s27 = sshll.u32 %s1265_s30, 7  ;;  %s406_s24 = scalar_lea.vmem [#allocation12], %s886_s4 }
  0xa3   : > { %924 = vmatpush3.bf16.msra.mxu0 %v1052_v1  ;;  %932 = vmatpush3.bf16.msra.mxu1 %v1055_v3  ;;  %v890_v7 = vld [vmem:[%s1693_s5] ss:$0 sm:$0xff]  ;;  %s751_s0 = sshll.u32 %s406_s24, 4  ;;  %s1638_s11 = scalar_lea.hbm %s1696_s8, %s906_s27  ;;  %s1640_s0 = int_to_ptr.vmem [resolvable:$true] %s751_s0 }
  0xa4   : > { %925 = vmatprep.subr.bf16.mxu0 %v1281_v0  ;;  %933 = vmatprep.subr.bf16.mxu1 %v1281_v0  ;;  %v895_v19 = vld [vmem:[%s1691_s3] ss:$0 sm:$0xff]  ;;  %s737_s30 = scalar_lea.sflag [#allocation6], %s1562_s19  ;;  %s1179_s4 = scalar_lea.vmem %s1640_s0, 128 }
  0xa5   : > { %v1057_v38 = vld [vmem:[%s1694_s6] sm:$0xff]   ;;  %p1180_p2 = scmp.ne.s32.totalorder %s1640_s0, %s1179_s4  ;;  %p1729_p6 = scmp.ne.s32.totalorder %s1718_s23, 0 }
  0xa6   : > { %v901_v48 = vld [vmem:[%s1695_s7] ss:$0 sm:$0xff]  ;;  %s1284_s13 = smov [#allocation12]  }
  0xa7   : > { %926 = vmatpush3.bf16.msra.mxu0 %v1053_v2  ;;  %934 = vmatpush3.bf16.msra.mxu1 %v1056_v5  ;;  %p1181_p10 = pnand %p1180_p2, %p1729_p6  ;;  %s1183_s20 = sshll.u32 %s1284_s13, 4  ;;  %s1184_s20 = int_to_ptr.vmem [resolvable:$false] %s1183_s20 }
  0xa8   : > { %939 = vmatprep.subr.bf16.mxu0 %v1281_v0  ;;  %945 = vmatprep.subr.bf16.mxu1 %v1281_v0  ;;  %s1185_s17 = scalar_lea.vmem %s1184_s20, 256  ;;  %p1186_p4 = scmp.lt.s32.totalorder %s1640_s0, %s1184_s20 }
  0xa9   : > { %p1182_p3 = pneg %p1181_p10  ;;  %p1187_p9 = scmp.lt.s32.totalorder %s1185_s17, %s1179_s4 }
  0xaa   : > { %928 = vmatmul.mubr.msk.bf16.vlgmr.msra.gmra.mrb[0].mxu0 %vm442_vm1, %v1054_v4  ;;  %936 = vmatmul.mubr.msk.bf16.vlgmr.msra.gmra.mrb[0].mxu1 %vm442_vm1, %v494_v6 }
  0xab   : > { %941 = vmatprep.mubr.msk.bf16.mxu0 %vm1282_vm0, %v1281_v0  ;;  %947 = vmatprep.mubr.msk.bf16.mxu1 %vm1282_vm0, %v1281_v0  ;;  %p1188_p5 = por %p1187_p9, %p1186_p4 }
  0xad   : > { %p1189_p7 = pnand %p1188_p5, %p1182_p3 }
 0x17d   : > { %v480_v8 = vpop.f32.mrb[0].mxu0  ;;  %v556_v14 = vpop.f32.mrb[0].mxu1 }
 0x17e   : > { %v929_v9 = vpop.f32.mrb[1].mxu0  ;;  %v481_v11 = vadd.f32 %v890_v7, %v480_v8  ;;  %v937_v15 = vpop.f32.mrb[1].mxu1  ;;  %v557_v20 = vadd.f32 %v895_v19, %v556_v14 }
 0x17f   : > { %v483_v10 = vpop.f32.mrb[2].mxu0  ;;  %v559_v17 = vpop.f32.mrb[2].mxu1 }
 0x180   : > { %v484_v12 = vadd.f32 %v890_v7, %v483_v10  ;;  %v930_v13 = vpop.f32.mrb[3].mxu0  ;;  %v938_v18 = vpop.f32.mrb[3].mxu1  ;;  %v562_v22 = vmul.f32 0.17677669, %v557_v20 }
 0x182   : > { %v487_v16 = vpack.c.bf16 %v484_v12, %v481_v11  ;;  %v563_v24 = vpack.c.bf16 %v562_v22, %v562_v22 }
 0x184   : > { %488 = vst.msk [vmem:[#allocation2] sm:$0xff] %vm442_vm1, %v487_v16 }
 0x18b   : > { %v564_v21 = vld [vmem:[#allocation2] sm:$0xff] }
 0x18c   : > { %v570_v23 = vsel %vm442_vm1, %v564_v21, 0 }
 0x18d   : > { %940 = vmatpush3.bf16.xpose.msra.mxu0 %v570_v23 }
 0x18e   : > { %951 = vmatprep.subr.bf16.mxu0 %v1281_v0 }
 0x194   : > { %942 = vmatmul.mubr.msk.bf16.vlgmr.msra.gmra.mrb[4].mxu0 %vm442_vm1, %v563_v24 }
 0x195   : > { %955 = vmatprep.mubr.msk.bf16.mxu0 %vm1282_vm0, %v1281_v0  ;;  %952 = vmatpush3.bf16.msra.mxu0 %v1057_v38 }
 0x196   : > { %953 = vmatprep.subr.bf16.mxu0 %v1281_v0 }
 0x199   : > { %954 = vmatpush3.bf16.msra.mxu0 %v1058_v39 }
 0x267   : > { %v606_v25 = vpop.f32.mrb[4].mxu0 }
 0x268   : > { %v943_v26 = vpop.f32.mrb[5].mxu0  ;;  %v613_v27 = vsel %vm612_vm2, %v606_v25, -inf }
 0x269   : > { %614 = vmax.xlane.f32.xlu0 %v613_v27  ;;  %v609_v28 = vpop.f32.mrb[6].mxu0 }
 0x26a   : > { %v944_v29 = vpop.f32.mrb[7].mxu0 }
 0x27f   : > { %490 = vrot.lane.b32.xlu0 %v487_v16, %s1283_s16 }
 0x2f6   : > { %v615_v30 = vpop.xlane.xlu0 %614 }
 0x2f7   : > { %v616_v31 = vsub.f32 %v606_v25, %v615_v30 }
 0x2f9   : > { %v617_v32 = vmul.f32 1.442695, %v616_v31 }
 0x2fa   : > { %v491_v33 = vpop.permute.xlu0 %490 }
 0x2fb   : > { %1059 = vpow2.f32 %v617_v32  ;;  %493 = vst.msk [vmem:[#allocation3] sm:$0xff] %vm442_vm1, %v491_v33 }
 0x302   : > { %v565_v34 = vld [vmem:[#allocation3] sm:$0xff] }
 0x303   : > { %946 = vmatpush3.bf16.msra.mxu1 %v565_v34 }
 0x305   : > { %v1060_v35 = vpop.eup %1059 }
 0x306   : > { %v619_v36 = vsel %vm612_vm2, %v1060_v35, 0.0  ;;  %v622_v37 = vpack.c.bf16 %v1060_v35, %v1060_v35 }
 0x307   : > { %620 = vadd.xlane.f32.xlu1 %v619_v36 }
 0x308   : > { %948 = vmatmul.mubr.msk.bf16.vlgmr.msra.gmra.mrb[4].mxu1 %vm612_vm2, %v622_v37 }
 0x394   : > { %v621_v40 = vpop.xlane.xlu1 %620 }
 0x395   : > { %1061 = vrcp.f32 %v621_v40 }
 0x39f   : > { %v1062_v41 = vpop.eup %1061 }
 0x3db   : > { %v660_v42 = vpop.f32.mrb[4].mxu1 }
 0x3dc   : > { %v667_v43 = vmul.f32 %v1062_v41, %v660_v42  ;;  %v949_v44 = vpop.f32.mrb[5].mxu1 }
 0x3dd   : > { %v663_v45 = vpop.f32.mrb[6].mxu1 }
 0x3de   : > { %v668_v46 = vpack.c.bf16 %v667_v43, %v667_v43  ;;  %v950_v47 = vpop.f32.mrb[7].mxu1 }
 0x3e0   : > { %956 = vmatmul.mubr.msk.bf16.vlgmr.msra.gmra.mrb[8].mxu0 %vm442_vm1, %v668_v46 }
 0x4b3   : > { %v729_v49 = vpop.f32.mrb[8].mxu0 }
 0x4b4   : > { %v730_v50 = vadd.f32 %v901_v48, %v729_v49  ;;  %v957_v51 = vpop.f32.mrb[9].mxu0 }
 0x4b5   : > { %v732_v52 = vpop.f32.mrb[10].mxu0 }
 0x4b6   : > { %v958_v53 = vpop.f32.mrb[11].mxu0  ;;  %735 = vst.msk [vmem:[%s406_s24] sm:$0xff] %vm442_vm1, %v730_v50 }
 0x4b7   : > { %1192 = shalt.err (!%p1189_p7)
}
 0x4b8   : > { %s1193_s19 = scalar_lea.hbm %s1638_s11, 128  ;;  %s1197_s26 = scalar_lea.hbm %s1696_s8, 256 }
 0x4b9   : > { %p1194_p11 = scmp.ne.s32.totalorder %s1638_s11, %s1193_s19  ;;  %p1198_p12 = scmp.lt.u32.totalorder %s1638_s11, %s1696_s8 }
 0x4ba   : > { %p1199_p13 = scmp.lt.u32.totalorder %s1197_s26, %s1193_s19  ;;  %p1201_p2 = scmp.lt.u32.totalorder %s1193_s19, %s1638_s11 }
 0x4bb   : > { %p1195_p1 = pnand %p1194_p11, %p1729_p6 }
 0x4bc   : > { %p1200_p0 = por %p1199_p13, %p1198_p12 }
 0x4bd   : > { %p1196_p8 = pneg %p1195_p1 }
 0x4be   : > { %p1202_p10 = por %p1201_p2, %p1200_p0 }
 0x4c0   : > { %p1203_p3 = pnand %p1202_p10, %p1196_p8 }
 0x4c2   : > { %1206 = shalt.err (!%p1203_p3)
}
 0x4c3   : > { %971 = dma.vmem_to_hbm [thread:$0]  (%p1729_p6), %s1640_s0, 128, %s1638_s11, %s737_s30  }
 0x4c4 PF: > { %s1730_s2 = sld [smem:[#allocation18_spill]]  ;;  %s1731_s25 = sld [smem:[#allocation19_spill]] }
 0x4c5   : > { %p1733_p9 = scmp.ge.s32.totalorder %s1273_s10, 2 }
 0x4ca   : > { %s763_s27 = sand.u32 1, %s1730_s2   ;;  %p1732_p4 = scmp.ne.s32.totalorder %s1731_s25, 0 }
 0x4cb   : > { %s764_s24 = scalar_lea.sflag [#allocation6], %s763_s27 }
 0x4cc   : > { %p988_p5 = pnand %p1733_p9, %p1732_p4 }
 0x4ce   : > { %1248 = dma.done.wait (!%p988_p5), %s764_s24, 128  }
 0x4cf   : > { %1250 = vsyncadd (!%p988_p5), %s764_s24, 4294967168  ;;  %s28_s10 = sadd.s32 1, %s1273_s10   ;;  %s1734_s23 = sld [smem:[#allocation20_spill]] }
 0x4d0   : > { %p25_p7 = scmp.ge.s32.totalorder %s28_s10, 4   ;;  %s1735_s27 = smov %s1257_s28 }
 0x4d1   : > { %s1736_s28 = smov %s1261_s29  ;;  %s1737_s29 = smov %s1477_s12 }
 0x4d2   : > { %s1738_s30 = smov %s1269_s9  ;;  %27 = sbr.rel (!%p25_p7) target bundleno = 13 (0xd), region = 122 }
 0x4d5   : > { %s1739_s9 = smov %s1734_s23 }
 0x4d9   :  { %769 = vsyncpa [#allocation5], 1 }
 0x4da   :  { %771 = vsyncpa [#allocation5 + $0x1], 1 }
 0x4db   :  { %772 = vsyncpa [#allocation8], 1 }
 0x4dc   :  { %774 = vsyncpa [#allocation8 + $0x1], 1 }
 0x4dd   :  { %775 = vsyncpa [#allocation11], 1 }
 0x4de   :  { %776 = vsyncpa [#allocation6], 1 }
 0x4df   :  { %778 = vsyncpa [#allocation6 + $0x1], 1 }

</bundles_post_ra>
